<compile_context>
chip_gen: v5e
topology: v5e:2x2
jax: 0.10.0
libtpu: 0.0.40
codegen_flags: <defaults>
</compile_context>

<pallas_src>
import functools
import math

import jax
import jax.numpy as jnp
from jax.experimental import pallas as pl
from jax.experimental.pallas import tpu as pltpu

_COMPUTE = jnp.bfloat16          # MXU operand dtype (f32 accumulation everywhere)
_VMEM_LIMIT = 64 * 1024 * 1024   # explicit scoped-VMEM budget (fits v7x physical)


def _pick_tile(dim, target):
    """Use `target` (a multiple of 8/128) if it evenly divides `dim`, else the
    whole dim.  Targets should be swept per TPU generation (v6e can afford ~2x
    the v7x tiles; v5e prefers wide output tiles)."""
    return target if dim % target == 0 else dim


def _ln(x, g, b, eps):
    xf = x.astype(jnp.float32)
    mean = jnp.mean(xf, axis=-1, keepdims=True)
    var = jnp.mean(jnp.square(xf - mean), axis=-1, keepdims=True)
    return (xf - mean) * jax.lax.rsqrt(var + eps) * g + b


# ----------------------------- Pallas kernels ------------------------------ #

def _ln_qkv_kernel(x_ref, g_ref, b_ref, wqkv_ref, bqkv_ref, o_ref, *, eps):
    # o[i] = LN(x) @ Wqkv[i] + bqkv[i]   for i in {q, k, v}
    xn = _ln(x_ref[...], g_ref[...], b_ref[...], eps).astype(_COMPUTE)   # [tm, D]
    for i in range(3):
        o_ref[i] = (
            jnp.dot(xn, wqkv_ref[i].astype(_COMPUTE),
                    preferred_element_type=jnp.float32)
            + bqkv_ref[i]
        ).astype(o_ref.dtype)


def _attn_kernel(q_ref, k_ref, v_ref, bias_ref, wo_ref, bo_ref, res_ref, o_ref,
                 m_sc, l_sc, acc_sc, *, num_heads, scale):
    # Flash-style attention over KV blocks (grid axis 2, "arbitrary"),
    # fused with the output projection and the residual add.
    kv = pl.program_id(2)
    dk = q_ref.shape[-1] // num_heads

    @pl.when(kv == 0)
    def _():
        m_sc[...] = jnp.full(m_sc.shape, -jnp.inf, jnp.float32)
        l_sc[...] = jnp.zeros(l_sc.shape, jnp.float32)
        acc_sc[...] = jnp.zeros(acc_sc.shape, jnp.float32)

    q = q_ref[0, 0].astype(_COMPUTE)             # [tq, D]
    k = k_ref[0, 0].astype(_COMPUTE)             # [tk, D]
    v = v_ref[0, 0].astype(_COMPUTE)             # [tk, D]
    bias = bias_ref[0, 0].astype(jnp.float32)    # [tq, tk]

    for h in range(num_heads):                   # static unroll over heads
        cols = pl.ds(h * dk, dk)
        qh = q[:, h * dk:(h + 1) * dk]
        kh = k[:, h * dk:(h + 1) * dk]
        vh = v[:, h * dk:(h + 1) * dk]
        s = jax.lax.dot_general(qh, kh, (((1,), (1,)), ((), ())),
                                preferred_element_type=jnp.float32)
        s = s * scale + bias                                     # [tq, tk]
        m_prev = m_sc[h]                                         # [tq, 1]
        m_new = jnp.maximum(m_prev, jnp.max(s, axis=-1, keepdims=True))
        alpha = jnp.exp(m_prev - m_new)
        p = jnp.exp(s - m_new)                                   # [tq, tk]
        l_sc[h] = alpha * l_sc[h] + jnp.sum(p, axis=-1, keepdims=True)
        acc_sc[:, cols] = alpha * acc_sc[:, cols] + jnp.dot(
            p.astype(_COMPUTE), vh, preferred_element_type=jnp.float32)
        m_sc[h] = m_new

    @pl.when(kv == pl.num_programs(2) - 1)
    def _():
        for h in range(num_heads):
            cols = pl.ds(h * dk, dk)
            acc_sc[:, cols] = acc_sc[:, cols] * (1.0 / l_sc[h])
        out = acc_sc[...].astype(_COMPUTE)                       # [tq, D] lane-dense
        proj = jnp.dot(out, wo_ref[...].astype(_COMPUTE),
                       preferred_element_type=jnp.float32) + bo_ref[...]
        o_ref[0] = (proj + res_ref[0].astype(jnp.float32)).astype(o_ref.dtype)


def _ln_ffn_kernel(x_ref, g_ref, b_ref, w1_ref, b1_ref, w2_ref, b2_ref, o_ref,
                   xn_sc, acc_sc, *, eps):
    # o = x + W2 @ relu(W1 @ LN(x) + b1) + b2, with the Dff dimension tiled
    # over grid axis 1 and a resident f32 VMEM accumulator.
    j = pl.program_id(1)

    @pl.when(j == 0)
    def _():
        xn_sc[...] = _ln(x_ref[...], g_ref[...], b_ref[...], eps).astype(xn_sc.dtype)
        acc_sc[...] = x_ref[...].astype(jnp.float32) + b2_ref[...]   # residual + b2

    h = jnp.dot(xn_sc[...], w1_ref[...].astype(_COMPUTE),
                preferred_element_type=jnp.float32) + b1_ref[...]
    h = jnp.maximum(h, 0.0).astype(_COMPUTE)
    acc_sc[...] += jnp.dot(h, w2_ref[...].astype(_COMPUTE),
                           preferred_element_type=jnp.float32)

    @pl.when(j == pl.num_programs(1) - 1)
    def _():
        o_ref[...] = acc_sc[...].astype(o_ref.dtype)


def _ln_kernel(x_ref, g_ref, b_ref, o_ref, *, eps):
    o_ref[...] = _ln(x_ref[...], g_ref[...], b_ref[...], eps).astype(o_ref.dtype)


# ------------------------------ Pallas wrappers ----------------------------- #

def attention_sublayer(x, p, mask_bias, num_heads, eps):
    B, S, D = x.shape
    M = B * S
    dk = D // num_heads
    tm = _pick_tile(M, 256)

    # 1) LN1 + fused QKV projection -> [3, M, D]
    qkv = pl.pallas_call(
        functools.partial(_ln_qkv_kernel, eps=eps),
        grid=(M // tm,),
        out_shape=jax.ShapeDtypeStruct((3, M, D), x.dtype),
        in_specs=[
            pl.BlockSpec((tm, D), lambda i: (i, 0)),
            pl.BlockSpec((1, D), lambda i: (0, 0)),
            pl.BlockSpec((1, D), lambda i: (0, 0)),
            pl.BlockSpec((3, D, D), lambda i: (0, 0, 0)),
            pl.BlockSpec((3, 1, D), lambda i: (0, 0, 0)),
        ],
        out_specs=pl.BlockSpec((3, tm, D), lambda i: (0, i, 0)),
        compiler_params=pltpu.CompilerParams(
            dimension_semantics=("parallel",), vmem_limit_bytes=_VMEM_LIMIT),
        cost_estimate=pl.CostEstimate(
            flops=6 * M * D * D, transcendentals=0,
            bytes_accessed=4 * (4 * M * D + 3 * D * D)),
    )(x.reshape(M, D), p["ln1_g"].reshape(1, D), p["ln1_b"].reshape(1, D),
      p["wqkv"], p["bqkv"].reshape(3, 1, D))

    qkv = qkv.reshape(3, B, S, D)     # free metadata reshape

    # 2) flash attention + output projection + residual
    tq = _pick_tile(S, 256)
    tk = _pick_tile(S, 256)
    out = pl.pallas_call(
        functools.partial(_attn_kernel, num_heads=num_heads,
                          scale=1.0 / math.sqrt(dk)),
        grid=(B, S // tq, S // tk),
        out_shape=jax.ShapeDtypeStruct((B, S, D), x.dtype),
        in_specs=[
            pl.BlockSpec((1, 1, tq, D), lambda b, qi, ki: (0, b, qi, 0)),   # Q
            pl.BlockSpec((1, 1, tk, D), lambda b, qi, ki: (1, b, ki, 0)),   # K
            pl.BlockSpec((1, 1, tk, D), lambda b, qi, ki: (2, b, ki, 0)),   # V
            pl.BlockSpec((1, 1, tq, tk), lambda b, qi, ki: (b, 0, qi, ki)),  # mask bias
            pl.BlockSpec((D, D), lambda b, qi, ki: (0, 0)),                  # Wo
            pl.BlockSpec((1, D), lambda b, qi, ki: (0, 0)),                  # bo
            pl.BlockSpec((1, tq, D), lambda b, qi, ki: (b, qi, 0)),          # residual
        ],
        out_specs=pl.BlockSpec((1, tq, D), lambda b, qi, ki: (b, qi, 0)),
        scratch_shapes=[
            pltpu.VMEM((num_heads, tq, 1), jnp.float32),   # running max
            pltpu.VMEM((num_heads, tq, 1), jnp.float32),   # running denom
            pltpu.VMEM((tq, D), jnp.float32),              # lane-dense accumulator
        ],
        compiler_params=pltpu.CompilerParams(
            dimension_semantics=("parallel", "parallel", "arbitrary"),
            vmem_limit_bytes=_VMEM_LIMIT),
        cost_estimate=pl.CostEstimate(
            flops=4 * B * S * S * D + 2 * B * S * D * D,
            transcendentals=B * num_heads * S * S,
            bytes_accessed=4 * (5 * B * S * D + D * D) + 2 * B * S * S),
    )(qkv, qkv, qkv, mask_bias, p["wo"], p["bo"].reshape(1, D), x)
    return out


def ffn_sublayer(x, p, eps):
    B, S, D = x.shape
    M = B * S
    Dff = p["w1"].shape[1]
    tm = _pick_tile(M, 256)
    tff = _pick_tile(Dff, 512)
    out = pl.pallas_call(
        functools.partial(_ln_ffn_kernel, eps=eps),
        grid=(M // tm, Dff // tff),
        out_shape=jax.ShapeDtypeStruct((M, D), x.dtype),
        in_specs=[
            pl.BlockSpec((tm, D), lambda i, j: (i, 0)),
            pl.BlockSpec((1, D), lambda i, j: (0, 0)),
            pl.BlockSpec((1, D), lambda i, j: (0, 0)),
            pl.BlockSpec((D, tff), lambda i, j: (0, j)),
            pl.BlockSpec((1, tff), lambda i, j: (0, j)),
            pl.BlockSpec((tff, D), lambda i, j: (j, 0)),
            pl.BlockSpec((1, D), lambda i, j: (0, 0)),
        ],
        out_specs=pl.BlockSpec((tm, D), lambda i, j: (i, 0)),
        scratch_shapes=[
            pltpu.VMEM((tm, D), _COMPUTE),       # LN(x), computed once per M tile
            pltpu.VMEM((tm, D), jnp.float32),    # f32 accumulator (residual + FFN)
        ],
        compiler_params=pltpu.CompilerParams(
            dimension_semantics=("parallel", "arbitrary"),
            vmem_limit_bytes=_VMEM_LIMIT),
        cost_estimate=pl.CostEstimate(
            flops=4 * M * D * Dff, transcendentals=0,
            bytes_accessed=4 * (2 * M * D + 2 * D * Dff)),
    )(x.reshape(M, D), p["ln2_g"].reshape(1, D), p["ln2_b"].reshape(1, D),
      p["w1"], p["b1"].reshape(1, Dff), p["w2"], p["b2"].reshape(1, D))
    return out.reshape(B, S, D)


def layernorm(x2d, gamma, beta, eps):
    M, D = x2d.shape
    tm = _pick_tile(M, 512)
    return pl.pallas_call(
        functools.partial(_ln_kernel, eps=eps),
        grid=(M // tm,),
        out_shape=jax.ShapeDtypeStruct((M, D), x2d.dtype),
        in_specs=[
            pl.BlockSpec((tm, D), lambda i: (i, 0)),
            pl.BlockSpec((1, D), lambda i: (0, 0)),
            pl.BlockSpec((1, D), lambda i: (0, 0)),
        ],
        out_specs=pl.BlockSpec((tm, D), lambda i: (i, 0)),
        compiler_params=pltpu.CompilerParams(
            dimension_semantics=("parallel",)),
    )(x2d, gamma.reshape(1, D), beta.reshape(1, D))


def encoder_layer(x, p, mask_bias, num_heads, eps=1e-5):
    # Pre-norm sublayer connections; residuals are fused inside the kernels.
    # NOTE: the Annotated-Transformer LayerNorm uses eps=1e-6; PyTorch
    # nn.LayerNorm default (used here) is 1e-5 — adjust `eps` to match.
    x = attention_sublayer(x, p, mask_bias, num_heads, eps)
    x = ffn_sublayer(x, p, eps)
    return x


def attention_block(x, layer_params, final_ln, mask=None, *, num_heads):
    """Forward pass of AttentionBlock: N encoder layers + final LayerNorm.

    `num_heads` is keyword-only so it can be bound via functools.partial while
    `mask` stays positional (previously these collided)."""
    B, S, D = x.shape
    if mask is None:
        mask_bias = jnp.zeros((B, 1, S, S), dtype=jnp.bfloat16)
    else:
        mb = jnp.where(mask == 0, -1e9, 0.0).astype(jnp.bfloat16)
        mask_bias = jnp.broadcast_to(mb.reshape(B, 1, -1, S), (B, 1, S, S))

    for p in layer_params:
        x = encoder_layer(x, p, mask_bias, num_heads)

    out = layernorm(x.reshape(B * S, D), final_ln["g"], final_ln["b"], 1e-5)
    return out.reshape(B, S, D)


# ------------------------------ parameter init ------------------------------ #

def init_params(key, n_layers, d_model, d_ff):
    def nrm(k, shape):
        # weights_init_normal: N(0, 0.02)
        return (0.02 * jax.random.normal(k, shape)).astype(jnp.float32)

    layer_params = []
    for _ in range(n_layers):
        key, *ks = jax.random.split(key, 5)
        p = {
            "wqkv": nrm(ks[0], (3, d_model, d_model)),      # stacked Q/K/V weights
            "bqkv": jnp.zeros((3, d_model), jnp.float32),
            "wo": nrm(ks[1], (d_model, d_model)),
            "bo": jnp.zeros((d_model,), jnp.float32),
            "w1": nrm(ks[2], (d_model, d_ff)),
            "b1": jnp.zeros((d_ff,), jnp.float32),
            "w2": nrm(ks[3], (d_ff, d_model)),
            "b2": jnp.zeros((d_model,), jnp.float32),
            "ln1_g": jnp.ones((d_model,), jnp.float32),
            "ln1_b": jnp.zeros((d_model,), jnp.float32),
            "ln2_g": jnp.ones((d_model,), jnp.float32),
            "ln2_b": jnp.zeros((d_model,), jnp.float32),
        }
        layer_params.append(p)
    final_ln = {"g": jnp.ones((d_model,), jnp.float32),
                "b": jnp.zeros((d_model,), jnp.float32)}
    return layer_params, final_ln


# --------------------------- pure-JAX reference ------------------------------ #

def _ref_ln(x, g, b, eps):
    m = jnp.mean(x, -1, keepdims=True)
    v = jnp.mean((x - m) ** 2, -1, keepdims=True)
    return (x - m) / jnp.sqrt(v + eps) * g + b


def reference_forward(x, layer_params, final_ln, mask=None, *, num_heads,
                      eps=1e-5):
    B, S, D = x.shape
    dk = D // num_heads
    if mask is None:
        bias = jnp.zeros((B, 1, S, S), jnp.float32)
    else:
        bias = jnp.broadcast_to(
            jnp.where(mask.reshape(B, 1, -1, S) == 0, -1e9, 0.0), (B, 1, S, S))
    for p in layer_params:
        xn = _ref_ln(x, p["ln1_g"], p["ln1_b"], eps).reshape(B * S, D)

        def split(t):
            return t.reshape(B, S, num_heads, dk).transpose(0, 2, 1, 3)

        q = split(xn @ p["wqkv"][0] + p["bqkv"][0])
        k = split(xn @ p["wqkv"][1] + p["bqkv"][1])
        v = split(xn @ p["wqkv"][2] + p["bqkv"][2])
        s = jnp.einsum("bhqd,bhkd->bhqk", q, k) / math.sqrt(dk) + bias
        a = jax.nn.softmax(s, axis=-1)
        o = jnp.einsum("bhqk,bhkd->bhqd", a, v).transpose(0, 2, 1, 3)
        o = o.reshape(B * S, D) @ p["wo"] + p["bo"]
        x = x + o.reshape(B, S, D)
        xn = _ref_ln(x, p["ln2_g"], p["ln2_b"], eps).reshape(B * S, D)
        h = jnp.maximum(xn @ p["w1"] + p["b1"], 0.0)
        x = x + (h @ p["w2"] + p["b2"]).reshape(B, S, D)
    return _ref_ln(x, final_ln["g"], final_ln["b"], 1e-5)


# ----------------------------------- main ----------------------------------- #

if __name__ == "__main__":
    B, S, D, H, DFF, N = 2, 8, 32, 4, 64, 2

    key = jax.random.PRNGKey(0)
    kx, kp = jax.random.split(key)
    x = jax.random.normal(kx, (B, S, D), dtype=jnp.float32)
    mask = jnp.broadcast_to(jnp.tril(jnp.ones((S, S), jnp.int32)), (B, S, S))

    layer_params, final_ln = init_params(kp, N, D, DFF)

    fwd = jax.jit(functools.partial(attention_block, num_heads=H))
    out = fwd(x, layer_params, final_ln, mask)
    jax.block_until_ready(out)

    assert out.shape == (B, S, D)
    assert jnp.all(jnp.isfinite(out))

    ref = jax.jit(functools.partial(reference_forward, num_heads=H))(
        x, layer_params, final_ln, mask)
    max_err = float(jnp.max(jnp.abs(out - ref)))
    assert max_err < 5e-2, f"mismatch vs reference: {max_err}"

    print("KERNEL_OK")
</pallas_src>

<mosaic_0001>
module attributes {stable_mosaic.version = 11 : i64} {
  func.func @_ln_qkv_kernel(%arg0: i32, %arg1: memref<16x32xf32, #tpu.memory_space<vmem>>, %arg2: memref<1x32xf32, #tpu.memory_space<vmem>>, %arg3: memref<1x32xf32, #tpu.memory_space<vmem>>, %arg4: memref<3x32x32xf32, #tpu.memory_space<vmem>>, %arg5: memref<3x1x32xf32, #tpu.memory_space<vmem>>, %arg6: memref<3x16x32xf32, #tpu.memory_space<vmem>>) attributes {dimension_semantics = [#tpu.dimension_semantics<parallel>], iteration_bounds = array<i64: 1>, scalar_prefetch = 0 : i64, scratch_operands = 0 : i64, tpu.core_type = #tpu.core_type<tc>, window_params = [{transform_indices = @transform_0, window_bounds = array<i64: 16, 32>}, {pipeline_mode = #tpu.pipeline_mode<synchronous>, transform_indices = @transform_1, window_bounds = array<i64: 1, 32>}, {pipeline_mode = #tpu.pipeline_mode<synchronous>, transform_indices = @transform_2, window_bounds = array<i64: 1, 32>}, {pipeline_mode = #tpu.pipeline_mode<synchronous>, transform_indices = @transform_3, window_bounds = array<i64: 3, 32, 32>}, {pipeline_mode = #tpu.pipeline_mode<synchronous>, transform_indices = @transform_4, window_bounds = array<i64: 3, 1, 32>}, {transform_indices = @transform_5, window_bounds = array<i64: 3, 16, 32>}]} {
    %c0 = arith.constant 0 : index
    %c0_0 = arith.constant 0 : index
    %0 = vector.load %arg1[%c0, %c0_0] : memref<16x32xf32, #tpu.memory_space<vmem>>, vector<16x32xf32>
    %c0_1 = arith.constant 0 : index
    %c0_2 = arith.constant 0 : index
    %1 = vector.load %arg2[%c0_1, %c0_2] : memref<1x32xf32, #tpu.memory_space<vmem>>, vector<1x32xf32>
    %c0_3 = arith.constant 0 : index
    %c0_4 = arith.constant 0 : index
    %2 = vector.load %arg3[%c0_3, %c0_4] : memref<1x32xf32, #tpu.memory_space<vmem>>, vector<1x32xf32>
    %cst = arith.constant dense<0.000000e+00> : vector<16xf32>
    %3 = vector.multi_reduction <add>, %0, %cst [1] : vector<16x32xf32> to vector<16xf32>
    %4 = vector.shape_cast %3 : vector<16xf32> to vector<16x1xf32>
    %cst_5 = arith.constant 3.200000e+01 : f32
    %5 = vector.broadcast %cst_5 : f32 to vector<16x1xf32>
    %6 = arith.divf %4, %5 : vector<16x1xf32>
    %7 = vector.broadcast %6 : vector<16x1xf32> to vector<16x32xf32>
    %8 = arith.subf %0, %7 : vector<16x32xf32>
    %9 = arith.mulf %8, %8 : vector<16x32xf32>
    %cst_6 = arith.constant dense<0.000000e+00> : vector<16xf32>
    %10 = vector.multi_reduction <add>, %9, %cst_6 [1] : vector<16x32xf32> to vector<16xf32>
    %11 = vector.shape_cast %10 : vector<16xf32> to vector<16x1xf32>
    %cst_7 = arith.constant 3.200000e+01 : f32
    %12 = vector.broadcast %cst_7 : f32 to vector<16x1xf32>
    %13 = arith.divf %11, %12 : vector<16x1xf32>
    %14 = vector.broadcast %6 : vector<16x1xf32> to vector<16x32xf32>
    %15 = arith.subf %0, %14 : vector<16x32xf32>
    %cst_8 = arith.constant 9.99999974E-6 : f32
    %16 = vector.broadcast %cst_8 : f32 to vector<16x1xf32>
    %17 = arith.addf %13, %16 : vector<16x1xf32>
    %18 = math.rsqrt %17 : vector<16x1xf32>
    %19 = vector.broadcast %18 : vector<16x1xf32> to vector<16x32xf32>
    %20 = arith.mulf %15, %19 : vector<16x32xf32>
    %21 = vector.broadcast %1 : vector<1x32xf32> to vector<16x32xf32>
    %22 = arith.mulf %20, %21 : vector<16x32xf32>
    %23 = vector.broadcast %2 : vector<1x32xf32> to vector<16x32xf32>
    %24 = arith.addf %22, %23 : vector<16x32xf32>
    %25 = arith.truncf %24 : vector<16x32xf32> to vector<16x32xbf16>
    %c0_9 = arith.constant 0 : index
    %c0_10 = arith.constant 0 : index
    %c0_11 = arith.constant 0 : index
    %26 = vector.load %arg4[%c0_9, %c0_10, %c0_11] : memref<3x32x32xf32, #tpu.memory_space<vmem>>, vector<1x32x32xf32>
    %27 = vector.shape_cast %26 : vector<1x32x32xf32> to vector<32x32xf32>
    %28 = arith.truncf %27 : vector<32x32xf32> to vector<32x32xbf16>
    %cst_12 = arith.constant dense<0.000000e+00> : vector<16x32xf32>
    %29 = tpu.matmul %25, %28, %cst_12 {dimension_numbers = #tpu.dot_dimension_numbers<[1], [0], [0], [1], [0, 0, 1, 1], [], []>} : vector<16x32xbf16>, vector<32x32xbf16>, vector<16x32xf32> -> vector<16x32xf32>
    %c0_13 = arith.constant 0 : index
    %c0_14 = arith.constant 0 : index
    %c0_15 = arith.constant 0 : index
    %30 = vector.load %arg5[%c0_13, %c0_14, %c0_15] : memref<3x1x32xf32, #tpu.memory_space<vmem>>, vector<1x1x32xf32>
    %31 = vector.shape_cast %30 : vector<1x1x32xf32> to vector<1x32xf32>
    %32 = vector.broadcast %31 : vector<1x32xf32> to vector<16x32xf32>
    %33 = arith.addf %29, %32 : vector<16x32xf32>
    %c0_16 = arith.constant 0 : index
    %c0_17 = arith.constant 0 : index
    %c0_18 = arith.constant 0 : index
    %34 = vector.load %arg6[%c0_16, %c0_17, %c0_18] : memref<3x16x32xf32, #tpu.memory_space<vmem>>, vector<1x16x32xf32>
    %35 = vector.shape_cast %34 : vector<1x16x32xf32> to vector<16x32xf32>
    %36 = vector.shape_cast %33 : vector<16x32xf32> to vector<1x16x32xf32>
    tpu.vector_store %arg6[%c0_16, %c0_17, %c0_18], %36 {strides = array<i32>} : memref<3x16x32xf32, #tpu.memory_space<vmem>>, vector<1x16x32xf32>,
    %c1 = arith.constant 1 : index
    %c0_19 = arith.constant 0 : index
    %c0_20 = arith.constant 0 : index
    %37 = vector.load %arg4[%c1, %c0_19, %c0_20] : memref<3x32x32xf32, #tpu.memory_space<vmem>>, vector<1x32x32xf32>
    %38 = vector.shape_cast %37 : vector<1x32x32xf32> to vector<32x32xf32>
    %39 = arith.truncf %38 : vector<32x32xf32> to vector<32x32xbf16>
    %cst_21 = arith.constant dense<0.000000e+00> : vector<16x32xf32>
    %40 = tpu.matmul %25, %39, %cst_21 {dimension_numbers = #tpu.dot_dimension_numbers<[1], [0], [0], [1], [0, 0, 1, 1], [], []>} : vector<16x32xbf16>, vector<32x32xbf16>, vector<16x32xf32> -> vector<16x32xf32>
    %c1_22 = arith.constant 1 : index
    %c0_23 = arith.constant 0 : index
    %c0_24 = arith.constant 0 : index
    %41 = vector.load %arg5[%c1_22, %c0_23, %c0_24] : memref<3x1x32xf32, #tpu.memory_space<vmem>>, vector<1x1x32xf32>
    %42 = vector.shape_cast %41 : vector<1x1x32xf32> to vector<1x32xf32>
    %43 = vector.broadcast %42 : vector<1x32xf32> to vector<16x32xf32>
    %44 = arith.addf %40, %43 : vector<16x32xf32>
    %c1_25 = arith.constant 1 : index
    %c0_26 = arith.constant 0 : index
    %c0_27 = arith.constant 0 : index
    %45 = vector.load %arg6[%c1_25, %c0_26, %c0_27] : memref<3x16x32xf32, #tpu.memory_space<vmem>>, vector<1x16x32xf32>
    %46 = vector.shape_cast %45 : vector<1x16x32xf32> to vector<16x32xf32>
    %47 = vector.shape_cast %44 : vector<16x32xf32> to vector<1x16x32xf32>
    tpu.vector_store %arg6[%c1_25, %c0_26, %c0_27], %47 {strides = array<i32>} : memref<3x16x32xf32, #tpu.memory_space<vmem>>, vector<1x16x32xf32>,
    %c2 = arith.constant 2 : index
    %c0_28 = arith.constant 0 : index
    %c0_29 = arith.constant 0 : index
    %48 = vector.load %arg4[%c2, %c0_28, %c0_29] : memref<3x32x32xf32, #tpu.memory_space<vmem>>, vector<1x32x32xf32>
    %49 = vector.shape_cast %48 : vector<1x32x32xf32> to vector<32x32xf32>
    %50 = arith.truncf %49 : vector<32x32xf32> to vector<32x32xbf16>
    %cst_30 = arith.constant dense<0.000000e+00> : vector<16x32xf32>
    %51 = tpu.matmul %25, %50, %cst_30 {dimension_numbers = #tpu.dot_dimension_numbers<[1], [0], [0], [1], [0, 0, 1, 1], [], []>} : vector<16x32xbf16>, vector<32x32xbf16>, vector<16x32xf32> -> vector<16x32xf32>
    %c2_31 = arith.constant 2 : index
    %c0_32 = arith.constant 0 : index
    %c0_33 = arith.constant 0 : index
    %52 = vector.load %arg5[%c2_31, %c0_32, %c0_33] : memref<3x1x32xf32, #tpu.memory_space<vmem>>, vector<1x1x32xf32>
    %53 = vector.shape_cast %52 : vector<1x1x32xf32> to vector<1x32xf32>
    %54 = vector.broadcast %53 : vector<1x32xf32> to vector<16x32xf32>
    %55 = arith.addf %51, %54 : vector<16x32xf32>
    %c2_34 = arith.constant 2 : index
    %c0_35 = arith.constant 0 : index
    %c0_36 = arith.constant 0 : index
    %56 = vector.load %arg6[%c2_34, %c0_35, %c0_36] : memref<3x16x32xf32, #tpu.memory_space<vmem>>, vector<1x16x32xf32>
    %57 = vector.shape_cast %56 : vector<1x16x32xf32> to vector<16x32xf32>
    %58 = vector.shape_cast %55 : vector<16x32xf32> to vector<1x16x32xf32>
    tpu.vector_store %arg6[%c2_34, %c0_35, %c0_36], %58 {strides = array<i32>} : memref<3x16x32xf32, #tpu.memory_space<vmem>>, vector<1x16x32xf32>,
    return
  }
  func.func @transform_0(%arg0: i32) -> (i32, i32) {
    %c0_i32 = arith.constant 0 : i32
    %c0_i32_0 = arith.constant 0 : i32
    return %arg0, %c0_i32 : i32, i32
  }
  func.func @transform_1(%arg0: i32) -> (i32, i32) {
    %c0_i32 = arith.constant 0 : i32
    %c0_i32_0 = arith.constant 0 : i32
    %c0_i32_1 = arith.constant 0 : i32
    return %c0_i32, %c0_i32_0 : i32, i32
  }
  func.func @transform_2(%arg0: i32) -> (i32, i32) {
    %c0_i32 = arith.constant 0 : i32
    %c0_i32_0 = arith.constant 0 : i32
    %c0_i32_1 = arith.constant 0 : i32
    return %c0_i32, %c0_i32_0 : i32, i32
  }
  func.func @transform_3(%arg0: i32) -> (i32, i32, i32) {
    %c0_i32 = arith.constant 0 : i32
    %c0_i32_0 = arith.constant 0 : i32
    %c0_i32_1 = arith.constant 0 : i32
    %c0_i32_2 = arith.constant 0 : i32
    return %c0_i32, %c0_i32_0, %c0_i32_1 : i32, i32, i32
  }
  func.func @transform_4(%arg0: i32) -> (i32, i32, i32) {
    %c0_i32 = arith.constant 0 : i32
    %c0_i32_0 = arith.constant 0 : i32
    %c0_i32_1 = arith.constant 0 : i32
    %c0_i32_2 = arith.constant 0 : i32
    return %c0_i32, %c0_i32_0, %c0_i32_1 : i32, i32, i32
  }
  func.func @transform_5(%arg0: i32) -> (i32, i32, i32) {
    %c0_i32 = arith.constant 0 : i32
    %c0_i32_0 = arith.constant 0 : i32
    %c0_i32_1 = arith.constant 0 : i32
    return %c0_i32, %arg0, %c0_i32_0 : i32, i32, i32
  }
}

module attributes {stable_mosaic.version = 11 : i64} {
  func.func @_attn_kernel(%arg0: i32, %arg1: i32, %arg2: i32, %arg3: memref<1x1x8x32xf32, #tpu.memory_space<vmem>>, %arg4: memref<1x1x8x32xf32, #tpu.memory_space<vmem>>, %arg5: memref<1x1x8x32xf32, #tpu.memory_space<vmem>>, %arg6: memref<1x1x8x8xbf16, #tpu.memory_space<vmem>>, %arg7: memref<32x32xf32, #tpu.memory_space<vmem>>, %arg8: memref<1x32xf32, #tpu.memory_space<vmem>>, %arg9: memref<1x8x32xf32, #tpu.memory_space<vmem>>, %arg10: memref<1x8x32xf32, #tpu.memory_space<vmem>>, %arg11: memref<4x8x1xf32, #tpu.memory_space<vmem>>, %arg12: memref<4x8x1xf32, #tpu.memory_space<vmem>>, %arg13: memref<8x32xf32, #tpu.memory_space<vmem>>) attributes {dimension_semantics = [#tpu.dimension_semantics<parallel>, #tpu.dimension_semantics<parallel>, #tpu.dimension_semantics<arbitrary>], iteration_bounds = array<i64: 2, 1, 1>, scalar_prefetch = 0 : i64, scratch_operands = 3 : i64, tpu.core_type = #tpu.core_type<tc>, window_params = [{transform_indices = @transform_0, window_bounds = array<i64: 1, 1, 8, 32>}, {transform_indices = @transform_1, window_bounds = array<i64: 1, 1, 8, 32>}, {transform_indices = @transform_2, window_bounds = array<i64: 1, 1, 8, 32>}, {transform_indices = @transform_3, window_bounds = array<i64: 1, 1, 8, 8>}, {pipeline_mode = #tpu.pipeline_mode<synchronous>, transform_indices = @transform_4, window_bounds = array<i64: 32, 32>}, {pipeline_mode = #tpu.pipeline_mode<synchronous>, transform_indices = @transform_5, window_bounds = array<i64: 1, 32>}, {transform_indices = @transform_6, window_bounds = array<i64: 1, 8, 32>}, {transform_indices = @transform_7, window_bounds = array<i64: 1, 8, 32>}]} {
    %c0_i32 = arith.constant 0 : i32
    %0 = arith.cmpi eq, %arg2, %c0_i32 : i32
    %1 = arith.extui %0 : i1 to i32
    %c0_i32_0 = arith.constant 0 : i32
    %2 = arith.cmpi ne, %1, %c0_i32_0 : i32
    scf.if %2 {
      %cst_95 = arith.constant 0xFF800000 : f32
      %162 = vector.broadcast %cst_95 : f32 to vector<4x8x1xf32>
      %c0_96 = arith.constant 0 : index
      %c0_97 = arith.constant 0 : index
      %c0_98 = arith.constant 0 : index
      %163 = vector.load %arg11[%c0_96, %c0_97, %c0_98] : memref<4x8x1xf32, #tpu.memory_space<vmem>>, vector<4x8x1xf32>
      tpu.vector_store %arg11[%c0_96, %c0_97, %c0_98], %162 {strides = array<i32>} : memref<4x8x1xf32, #tpu.memory_space<vmem>>, vector<4x8x1xf32>,
      %cst_99 = arith.constant 0.000000e+00 : f32
      %164 = vector.broadcast %cst_99 : f32 to vector<4x8x1xf32>
      %c0_100 = arith.constant 0 : index
      %c0_101 = arith.constant 0 : index
      %c0_102 = arith.constant 0 : index
      %165 = vector.load %arg12[%c0_100, %c0_101, %c0_102] : memref<4x8x1xf32, #tpu.memory_space<vmem>>, vector<4x8x1xf32>
      tpu.vector_store %arg12[%c0_100, %c0_101, %c0_102], %164 {strides = array<i32>} : memref<4x8x1xf32, #tpu.memory_space<vmem>>, vector<4x8x1xf32>,
      %cst_103 = arith.constant 0.000000e+00 : f32
      %166 = vector.broadcast %cst_103 : f32 to vector<8x32xf32>
      %c0_104 = arith.constant 0 : index
      %c0_105 = arith.constant 0 : index
      %167 = vector.load %arg13[%c0_104, %c0_105] : memref<8x32xf32, #tpu.memory_space<vmem>>, vector<8x32xf32>
      tpu.vector_store %arg13[%c0_104, %c0_105], %166 {strides = array<i32>} : memref<8x32xf32, #tpu.memory_space<vmem>>, vector<8x32xf32>,
    } else {
    }
    %c0 = arith.constant 0 : index
    %c0_1 = arith.constant 0 : index
    %c0_2 = arith.constant 0 : index
    %c0_3 = arith.constant 0 : index
    %3 = vector.load %arg3[%c0, %c0_1, %c0_2, %c0_3] : memref<1x1x8x32xf32, #tpu.memory_space<vmem>>, vector<1x1x8x32xf32>
    %4 = vector.shape_cast %3 : vector<1x1x8x32xf32> to vector<8x32xf32>
    %5 = arith.truncf %4 : vector<8x32xf32> to vector<8x32xbf16>
    %c0_4 = arith.constant 0 : index
    %c0_5 = arith.constant 0 : index
    %c0_6 = arith.constant 0 : index
    %c0_7 = arith.constant 0 : index
    %6 = vector.load %arg4[%c0_4, %c0_5, %c0_6, %c0_7] : memref<1x1x8x32xf32, #tpu.memory_space<vmem>>, vector<1x1x8x32xf32>
    %7 = vector.shape_cast %6 : vector<1x1x8x32xf32> to vector<8x32xf32>
    %8 = arith.truncf %7 : vector<8x32xf32> to vector<8x32xbf16>
    %c0_8 = arith.constant 0 : index
    %c0_9 = arith.constant 0 : index
    %c0_10 = arith.constant 0 : index
    %c0_11 = arith.constant 0 : index
    %9 = vector.load %arg5[%c0_8, %c0_9, %c0_10, %c0_11] : memref<1x1x8x32xf32, #tpu.memory_space<vmem>>, vector<1x1x8x32xf32>
    %10 = vector.shape_cast %9 : vector<1x1x8x32xf32> to vector<8x32xf32>
    %11 = arith.truncf %10 : vector<8x32xf32> to vector<8x32xbf16>
    %c0_12 = arith.constant 0 : index
    %c0_13 = arith.constant 0 : index
    %c0_14 = arith.constant 0 : index
    %c0_15 = arith.constant 0 : index
    %12 = vector.load %arg6[%c0_12, %c0_13, %c0_14, %c0_15] : memref<1x1x8x8xbf16, #tpu.memory_space<vmem>>, vector<1x1x8x8xbf16>
    %13 = vector.shape_cast %12 : vector<1x1x8x8xbf16> to vector<8x8xbf16>
    %14 = arith.extf %13 : vector<8x8xbf16> to vector<8x8xf32>
    %15 = vector.extract_strided_slice %5 {offsets = [0, 0], sizes = [8, 8], strides = [1, 1]} : vector<8x32xbf16> to vector<8x8xbf16>
    %16 = vector.extract_strided_slice %8 {offsets = [0, 0], sizes = [8, 8], strides = [1, 1]} : vector<8x32xbf16> to vector<8x8xbf16>
    %17 = vector.extract_strided_slice %11 {offsets = [0, 0], sizes = [8, 8], strides = [1, 1]} : vector<8x32xbf16> to vector<8x8xbf16>
    %cst = arith.constant dense<0.000000e+00> : vector<8x8xf32>
    %18 = tpu.matmul %15, %16, %cst {dimension_numbers = #tpu.dot_dimension_numbers<[1], [1], [0], [0], [0, 0, 1, 0], [], []>} : vector<8x8xbf16>, vector<8x8xbf16>, vector<8x8xf32> -> vector<8x8xf32>
    %cst_16 = arith.constant 0.353553385 : f32
    %19 = vector.broadcast %cst_16 : f32 to vector<8x8xf32>
    %20 = arith.mulf %18, %19 : vector<8x8xf32>
    %21 = arith.addf %20, %14 : vector<8x8xf32>
    %c0_17 = arith.constant 0 : index
    %c0_18 = arith.constant 0 : index
    %c0_19 = arith.constant 0 : index
    %22 = vector.load %arg11[%c0_17, %c0_18, %c0_19] : memref<4x8x1xf32, #tpu.memory_space<vmem>>, vector<1x8x1xf32>
    %23 = vector.shape_cast %22 : vector<1x8x1xf32> to vector<8x1xf32>
    %cst_20 = arith.constant dense<0xFF800000> : vector<8xf32>
    %24 = vector.multi_reduction <maximumf>, %21, %cst_20 [1] : vector<8x8xf32> to vector<8xf32>
    %25 = vector.shape_cast %24 : vector<8xf32> to vector<8x1xf32>
    %26 = arith.maximumf %23, %25 : vector<8x1xf32>
    %27 = arith.subf %23, %26 : vector<8x1xf32>
    %28 = math.exp %27 : vector<8x1xf32>
    %29 = vector.broadcast %26 : vector<8x1xf32> to vector<8x8xf32>
    %30 = arith.subf %21, %29 : vector<8x8xf32>
    %31 = math.exp %30 : vector<8x8xf32>
    %c0_21 = arith.constant 0 : index
    %c0_22 = arith.constant 0 : index
    %c0_23 = arith.constant 0 : index
    %32 = vector.load %arg12[%c0_21, %c0_22, %c0_23] : memref<4x8x1xf32, #tpu.memory_space<vmem>>, vector<1x8x1xf32>
    %33 = vector.shape_cast %32 : vector<1x8x1xf32> to vector<8x1xf32>
    %34 = arith.mulf %28, %33 : vector<8x1xf32>
    %cst_24 = arith.constant dense<0.000000e+00> : vector<8xf32>
    %35 = vector.multi_reduction <add>, %31, %cst_24 [1] : vector<8x8xf32> to vector<8xf32>
    %36 = vector.shape_cast %35 : vector<8xf32> to vector<8x1xf32>
    %37 = arith.addf %34, %36 : vector<8x1xf32>
    %c0_25 = arith.constant 0 : index
    %c0_26 = arith.constant 0 : index
    %c0_27 = arith.constant 0 : index
    %38 = vector.load %arg12[%c0_25, %c0_26, %c0_27] : memref<4x8x1xf32, #tpu.memory_space<vmem>>, vector<1x8x1xf32>
    %39 = vector.shape_cast %38 : vector<1x8x1xf32> to vector<8x1xf32>
    %40 = vector.shape_cast %37 : vector<8x1xf32> to vector<1x8x1xf32>
    tpu.vector_store %arg12[%c0_25, %c0_26, %c0_27], %40 {strides = array<i32>} : memref<4x8x1xf32, #tpu.memory_space<vmem>>, vector<1x8x1xf32>,
    %c0_28 = arith.constant 0 : index
    %c0_29 = arith.constant 0 : index
    %41 = vector.load %arg13[%c0_28, %c0_29] : memref<8x32xf32, #tpu.memory_space<vmem>>, vector<8x8xf32>
    %42 = vector.broadcast %28 : vector<8x1xf32> to vector<8x8xf32>
    %43 = arith.mulf %42, %41 : vector<8x8xf32>
    %44 = arith.truncf %31 : vector<8x8xf32> to vector<8x8xbf16>
    %cst_30 = arith.constant dense<0.000000e+00> : vector<8x8xf32>
    %45 = tpu.matmul %44, %17, %cst_30 {dimension_numbers = #tpu.dot_dimension_numbers<[1], [0], [0], [1], [0, 0, 1, 1], [], []>} : vector<8x8xbf16>, vector<8x8xbf16>, vector<8x8xf32> -> vector<8x8xf32>
    %46 = arith.addf %43, %45 : vector<8x8xf32>
    %c0_31 = arith.constant 0 : index
    %c0_32 = arith.constant 0 : index
    %47 = vector.load %arg13[%c0_31, %c0_32] : memref<8x32xf32, #tpu.memory_space<vmem>>, vector<8x8xf32>
    tpu.vector_store %arg13[%c0_31, %c0_32], %46 {strides = array<i32>} : memref<8x32xf32, #tpu.memory_space<vmem>>, vector<8x8xf32>,
    %c0_33 = arith.constant 0 : index
    %c0_34 = arith.constant 0 : index
    %c0_35 = arith.constant 0 : index
    %48 = vector.load %arg11[%c0_33, %c0_34, %c0_35] : memref<4x8x1xf32, #tpu.memory_space<vmem>>, vector<1x8x1xf32>
    %49 = vector.shape_cast %48 : vector<1x8x1xf32> to vector<8x1xf32>
    %50 = vector.shape_cast %26 : vector<8x1xf32> to vector<1x8x1xf32>
    tpu.vector_store %arg11[%c0_33, %c0_34, %c0_35], %50 {strides = array<i32>} : memref<4x8x1xf32, #tpu.memory_space<vmem>>, vector<1x8x1xf32>,
    %51 = vector.extract_strided_slice %5 {offsets = [0, 8], sizes = [8, 8], strides = [1, 1]} : vector<8x32xbf16> to vector<8x8xbf16>
    %52 = vector.extract_strided_slice %8 {offsets = [0, 8], sizes = [8, 8], strides = [1, 1]} : vector<8x32xbf16> to vector<8x8xbf16>
    %53 = vector.extract_strided_slice %11 {offsets = [0, 8], sizes = [8, 8], strides = [1, 1]} : vector<8x32xbf16> to vector<8x8xbf16>
    %cst_36 = arith.constant dense<0.000000e+00> : vector<8x8xf32>
    %54 = tpu.matmul %51, %52, %cst_36 {dimension_numbers = #tpu.dot_dimension_numbers<[1], [1], [0], [0], [0, 0, 1, 0], [], []>} : vector<8x8xbf16>, vector<8x8xbf16>, vector<8x8xf32> -> vector<8x8xf32>
    %cst_37 = arith.constant 0.353553385 : f32
    %55 = vector.broadcast %cst_37 : f32 to vector<8x8xf32>
    %56 = arith.mulf %54, %55 : vector<8x8xf32>
    %57 = arith.addf %56, %14 : vector<8x8xf32>
    %c1 = arith.constant 1 : index
    %c0_38 = arith.constant 0 : index
    %c0_39 = arith.constant 0 : index
    %58 = vector.load %arg11[%c1, %c0_38, %c0_39] : memref<4x8x1xf32, #tpu.memory_space<vmem>>, vector<1x8x1xf32>
    %59 = vector.shape_cast %58 : vector<1x8x1xf32> to vector<8x1xf32>
    %cst_40 = arith.constant dense<0xFF800000> : vector<8xf32>
    %60 = vector.multi_reduction <maximumf>, %57, %cst_40 [1] : vector<8x8xf32> to vector<8xf32>
    %61 = vector.shape_cast %60 : vector<8xf32> to vector<8x1xf32>
    %62 = arith.maximumf %59, %61 : vector<8x1xf32>
    %63 = arith.subf %59, %62 : vector<8x1xf32>
    %64 = math.exp %63 : vector<8x1xf32>
    %65 = vector.broadcast %62 : vector<8x1xf32> to vector<8x8xf32>
    %66 = arith.subf %57, %65 : vector<8x8xf32>
    %67 = math.exp %66 : vector<8x8xf32>
    %c1_41 = arith.constant 1 : index
    %c0_42 = arith.constant 0 : index
    %c0_43 = arith.constant 0 : index
    %68 = vector.load %arg12[%c1_41, %c0_42, %c0_43] : memref<4x8x1xf32, #tpu.memory_space<vmem>>, vector<1x8x1xf32>
    %69 = vector.shape_cast %68 : vector<1x8x1xf32> to vector<8x1xf32>
    %70 = arith.mulf %64, %69 : vector<8x1xf32>
    %cst_44 = arith.constant dense<0.000000e+00> : vector<8xf32>
    %71 = vector.multi_reduction <add>, %67, %cst_44 [1] : vector<8x8xf32> to vector<8xf32>
    %72 = vector.shape_cast %71 : vector<8xf32> to vector<8x1xf32>
    %73 = arith.addf %70, %72 : vector<8x1xf32>
    %c1_45 = arith.constant 1 : index
    %c0_46 = arith.constant 0 : index
    %c0_47 = arith.constant 0 : index
    %74 = vector.load %arg12[%c1_45, %c0_46, %c0_47] : memref<4x8x1xf32, #tpu.memory_space<vmem>>, vector<1x8x1xf32>
    %75 = vector.shape_cast %74 : vector<1x8x1xf32> to vector<8x1xf32>
    %76 = vector.shape_cast %73 : vector<8x1xf32> to vector<1x8x1xf32>
    tpu.vector_store %arg12[%c1_45, %c0_46, %c0_47], %76 {strides = array<i32>} : memref<4x8x1xf32, #tpu.memory_space<vmem>>, vector<1x8x1xf32>,
    %c0_48 = arith.constant 0 : index
    %c8 = arith.constant 8 : index
    %77 = vector.load %arg13[%c0_48, %c8] : memref<8x32xf32, #tpu.memory_space<vmem>>, vector<8x8xf32>
    %78 = vector.broadcast %64 : vector<8x1xf32> to vector<8x8xf32>
    %79 = arith.mulf %78, %77 : vector<8x8xf32>
    %80 = arith.truncf %67 : vector<8x8xf32> to vector<8x8xbf16>
    %cst_49 = arith.constant dense<0.000000e+00> : vector<8x8xf32>
    %81 = tpu.matmul %80, %53, %cst_49 {dimension_numbers = #tpu.dot_dimension_numbers<[1], [0], [0], [1], [0, 0, 1, 1], [], []>} : vector<8x8xbf16>, vector<8x8xbf16>, vector<8x8xf32> -> vector<8x8xf32>
    %82 = arith.addf %79, %81 : vector<8x8xf32>
    %c0_50 = arith.constant 0 : index
    %c8_51 = arith.constant 8 : index
    %83 = vector.load %arg13[%c0_50, %c8_51] : memref<8x32xf32, #tpu.memory_space<vmem>>, vector<8x8xf32>
    tpu.vector_store %arg13[%c0_50, %c8_51], %82 {strides = array<i32>} : memref<8x32xf32, #tpu.memory_space<vmem>>, vector<8x8xf32>,
    %c1_52 = arith.constant 1 : index
    %c0_53 = arith.constant 0 : index
    %c0_54 = arith.constant 0 : index
    %84 = vector.load %arg11[%c1_52, %c0_53, %c0_54] : memref<4x8x1xf32, #tpu.memory_space<vmem>>, vector<1x8x1xf32>
    %85 = vector.shape_cast %84 : vector<1x8x1xf32> to vector<8x1xf32>
    %86 = vector.shape_cast %62 : vector<8x1xf32> to vector<1x8x1xf32>
    tpu.vector_store %arg11[%c1_52, %c0_53, %c0_54], %86 {strides = array<i32>} : memref<4x8x1xf32, #tpu.memory_space<vmem>>, vector<1x8x1xf32>,
    %87 = vector.extract_strided_slice %5 {offsets = [0, 16], sizes = [8, 8], strides = [1, 1]} : vector<8x32xbf16> to vector<8x8xbf16>
    %88 = vector.extract_strided_slice %8 {offsets = [0, 16], sizes = [8, 8], strides = [1, 1]} : vector<8x32xbf16> to vector<8x8xbf16>
    %89 = vector.extract_strided_slice %11 {offsets = [0, 16], sizes = [8, 8], strides = [1, 1]} : vector<8x32xbf16> to vector<8x8xbf16>
    %cst_55 = arith.constant dense<0.000000e+00> : vector<8x8xf32>
    %90 = tpu.matmul %87, %88, %cst_55 {dimension_numbers = #tpu.dot_dimension_numbers<[1], [1], [0], [0], [0, 0, 1, 0], [], []>} : vector<8x8xbf16>, vector<8x8xbf16>, vector<8x8xf32> -> vector<8x8xf32>
    %cst_56 = arith.constant 0.353553385 : f32
    %91 = vector.broadcast %cst_56 : f32 to vector<8x8xf32>
    %92 = arith.mulf %90, %91 : vector<8x8xf32>
    %93 = arith.addf %92, %14 : vector<8x8xf32>
    %c2 = arith.constant 2 : index
    %c0_57 = arith.constant 0 : index
    %c0_58 = arith.constant 0 : index
    %94 = vector.load %arg11[%c2, %c0_57, %c0_58] : memref<4x8x1xf32, #tpu.memory_space<vmem>>, vector<1x8x1xf32>
    %95 = vector.shape_cast %94 : vector<1x8x1xf32> to vector<8x1xf32>
    %cst_59 = arith.constant dense<0xFF800000> : vector<8xf32>
    %96 = vector.multi_reduction <maximumf>, %93, %cst_59 [1] : vector<8x8xf32> to vector<8xf32>
    %97 = vector.shape_cast %96 : vector<8xf32> to vector<8x1xf32>
    %98 = arith.maximumf %95, %97 : vector<8x1xf32>
    %99 = arith.subf %95, %98 : vector<8x1xf32>
    %100 = math.exp %99 : vector<8x1xf32>
    %101 = vector.broadcast %98 : vector<8x1xf32> to vector<8x8xf32>
    %102 = arith.subf %93, %101 : vector<8x8xf32>
    %103 = math.exp %102 : vector<8x8xf32>
    %c2_60 = arith.constant 2 : index
    %c0_61 = arith.constant 0 : index
    %c0_62 = arith.constant 0 : index
    %104 = vector.load %arg12[%c2_60, %c0_61, %c0_62] : memref<4x8x1xf32, #tpu.memory_space<vmem>>, vector<1x8x1xf32>
    %105 = vector.shape_cast %104 : vector<1x8x1xf32> to vector<8x1xf32>
    %106 = arith.mulf %100, %105 : vector<8x1xf32>
    %cst_63 = arith.constant dense<0.000000e+00> : vector<8xf32>
    %107 = vector.multi_reduction <add>, %103, %cst_63 [1] : vector<8x8xf32> to vector<8xf32>
    %108 = vector.shape_cast %107 : vector<8xf32> to vector<8x1xf32>
    %109 = arith.addf %106, %108 : vector<8x1xf32>
    %c2_64 = arith.constant 2 : index
    %c0_65 = arith.constant 0 : index
    %c0_66 = arith.constant 0 : index
    %110 = vector.load %arg12[%c2_64, %c0_65, %c0_66] : memref<4x8x1xf32, #tpu.memory_space<vmem>>, vector<1x8x1xf32>
    %111 = vector.shape_cast %110 : vector<1x8x1xf32> to vector<8x1xf32>
    %112 = vector.shape_cast %109 : vector<8x1xf32> to vector<1x8x1xf32>
    tpu.vector_store %arg12[%c2_64, %c0_65, %c0_66], %112 {strides = array<i32>} : memref<4x8x1xf32, #tpu.memory_space<vmem>>, vector<1x8x1xf32>,
    %c0_67 = arith.constant 0 : index
    %c16 = arith.constant 16 : index
    %113 = vector.load %arg13[%c0_67, %c16] : memref<8x32xf32, #tpu.memory_space<vmem>>, vector<8x8xf32>
    %114 = vector.broadcast %100 : vector<8x1xf32> to vector<8x8xf32>
    %115 = arith.mulf %114, %113 : vector<8x8xf32>
    %116 = arith.truncf %103 : vector<8x8xf32> to vector<8x8xbf16>
    %cst_68 = arith.constant dense<0.000000e+00> : vector<8x8xf32>
    %117 = tpu.matmul %116, %89, %cst_68 {dimension_numbers = #tpu.dot_dimension_numbers<[1], [0], [0], [1], [0, 0, 1, 1], [], []>} : vector<8x8xbf16>, vector<8x8xbf16>, vector<8x8xf32> -> vector<8x8xf32>
    %118 = arith.addf %115, %117 : vector<8x8xf32>
    %c0_69 = arith.constant 0 : index
    %c16_70 = arith.constant 16 : index
    %119 = vector.load %arg13[%c0_69, %c16_70] : memref<8x32xf32, #tpu.memory_space<vmem>>, vector<8x8xf32>
    tpu.vector_store %arg13[%c0_69, %c16_70], %118 {strides = array<i32>} : memref<8x32xf32, #tpu.memory_space<vmem>>, vector<8x8xf32>,
    %c2_71 = arith.constant 2 : index
    %c0_72 = arith.constant 0 : index
    %c0_73 = arith.constant 0 : index
    %120 = vector.load %arg11[%c2_71, %c0_72, %c0_73] : memref<4x8x1xf32, #tpu.memory_space<vmem>>, vector<1x8x1xf32>
    %121 = vector.shape_cast %120 : vector<1x8x1xf32> to vector<8x1xf32>
    %122 = vector.shape_cast %98 : vector<8x1xf32> to vector<1x8x1xf32>
    tpu.vector_store %arg11[%c2_71, %c0_72, %c0_73], %122 {strides = array<i32>} : memref<4x8x1xf32, #tpu.memory_space<vmem>>, vector<1x8x1xf32>,
    %123 = vector.extract_strided_slice %5 {offsets = [0, 24], sizes = [8, 8], strides = [1, 1]} : vector<8x32xbf16> to vector<8x8xbf16>
    %124 = vector.extract_strided_slice %8 {offsets = [0, 24], sizes = [8, 8], strides = [1, 1]} : vector<8x32xbf16> to vector<8x8xbf16>
    %125 = vector.extract_strided_slice %11 {offsets = [0, 24], sizes = [8, 8], strides = [1, 1]} : vector<8x32xbf16> to vector<8x8xbf16>
    %cst_74 = arith.constant dense<0.000000e+00> : vector<8x8xf32>
    %126 = tpu.matmul %123, %124, %cst_74 {dimension_numbers = #tpu.dot_dimension_numbers<[1], [1], [0], [0], [0, 0, 1, 0], [], []>} : vector<8x8xbf16>, vector<8x8xbf16>, vector<8x8xf32> -> vector<8x8xf32>
    %cst_75 = arith.constant 0.353553385 : f32
    %127 = vector.broadcast %cst_75 : f32 to vector<8x8xf32>
    %128 = arith.mulf %126, %127 : vector<8x8xf32>
    %129 = arith.addf %128, %14 : vector<8x8xf32>
    %c3 = arith.constant 3 : index
    %c0_76 = arith.constant 0 : index
    %c0_77 = arith.constant 0 : index
    %130 = vector.load %arg11[%c3, %c0_76, %c0_77] : memref<4x8x1xf32, #tpu.memory_space<vmem>>, vector<1x8x1xf32>
    %131 = vector.shape_cast %130 : vector<1x8x1xf32> to vector<8x1xf32>
    %cst_78 = arith.constant dense<0xFF800000> : vector<8xf32>
    %132 = vector.multi_reduction <maximumf>, %129, %cst_78 [1] : vector<8x8xf32> to vector<8xf32>
    %133 = vector.shape_cast %132 : vector<8xf32> to vector<8x1xf32>
    %134 = arith.maximumf %131, %133 : vector<8x1xf32>
    %135 = arith.subf %131, %134 : vector<8x1xf32>
    %136 = math.exp %135 : vector<8x1xf32>
    %137 = vector.broadcast %134 : vector<8x1xf32> to vector<8x8xf32>
    %138 = arith.subf %129, %137 : vector<8x8xf32>
    %139 = math.exp %138 : vector<8x8xf32>
    %c3_79 = arith.constant 3 : index
    %c0_80 = arith.constant 0 : index
    %c0_81 = arith.constant 0 : index
    %140 = vector.load %arg12[%c3_79, %c0_80, %c0_81] : memref<4x8x1xf32, #tpu.memory_space<vmem>>, vector<1x8x1xf32>
    %141 = vector.shape_cast %140 : vector<1x8x1xf32> to vector<8x1xf32>
    %142 = arith.mulf %136, %141 : vector<8x1xf32>
    %cst_82 = arith.constant dense<0.000000e+00> : vector<8xf32>
    %143 = vector.multi_reduction <add>, %139, %cst_82 [1] : vector<8x8xf32> to vector<8xf32>
    %144 = vector.shape_cast %143 : vector<8xf32> to vector<8x1xf32>
    %145 = arith.addf %142, %144 : vector<8x1xf32>
    %c3_83 = arith.constant 3 : index
    %c0_84 = arith.constant 0 : index
    %c0_85 = arith.constant 0 : index
    %146 = vector.load %arg12[%c3_83, %c0_84, %c0_85] : memref<4x8x1xf32, #tpu.memory_space<vmem>>, vector<1x8x1xf32>
    %147 = vector.shape_cast %146 : vector<1x8x1xf32> to vector<8x1xf32>
    %148 = vector.shape_cast %145 : vector<8x1xf32> to vector<1x8x1xf32>
    tpu.vector_store %arg12[%c3_83, %c0_84, %c0_85], %148 {strides = array<i32>} : memref<4x8x1xf32, #tpu.memory_space<vmem>>, vector<1x8x1xf32>,
    %c0_86 = arith.constant 0 : index
    %c24 = arith.constant 24 : index
    %149 = vector.load %arg13[%c0_86, %c24] : memref<8x32xf32, #tpu.memory_space<vmem>>, vector<8x8xf32>
    %150 = vector.broadcast %136 : vector<8x1xf32> to vector<8x8xf32>
    %151 = arith.mulf %150, %149 : vector<8x8xf32>
    %152 = arith.truncf %139 : vector<8x8xf32> to vector<8x8xbf16>
    %cst_87 = arith.constant dense<0.000000e+00> : vector<8x8xf32>
    %153 = tpu.matmul %152, %125, %cst_87 {dimension_numbers = #tpu.dot_dimension_numbers<[1], [0], [0], [1], [0, 0, 1, 1], [], []>} : vector<8x8xbf16>, vector<8x8xbf16>, vector<8x8xf32> -> vector<8x8xf32>
    %154 = arith.addf %151, %153 : vector<8x8xf32>
    %c0_88 = arith.constant 0 : index
    %c24_89 = arith.constant 24 : index
    %155 = vector.load %arg13[%c0_88, %c24_89] : memref<8x32xf32, #tpu.memory_space<vmem>>, vector<8x8xf32>
    tpu.vector_store %arg13[%c0_88, %c24_89], %154 {strides = array<i32>} : memref<8x32xf32, #tpu.memory_space<vmem>>, vector<8x8xf32>,
    %c3_90 = arith.constant 3 : index
    %c0_91 = arith.constant 0 : index
    %c0_92 = arith.constant 0 : index
    %156 = vector.load %arg11[%c3_90, %c0_91, %c0_92] : memref<4x8x1xf32, #tpu.memory_space<vmem>>, vector<1x8x1xf32>
    %157 = vector.shape_cast %156 : vector<1x8x1xf32> to vector<8x1xf32>
    %158 = vector.shape_cast %134 : vector<8x1xf32> to vector<1x8x1xf32>
    tpu.vector_store %arg11[%c3_90, %c0_91, %c0_92], %158 {strides = array<i32>} : memref<4x8x1xf32, #tpu.memory_space<vmem>>, vector<1x8x1xf32>,
    %c0_i32_93 = arith.constant 0 : i32
    %159 = arith.cmpi eq, %arg2, %c0_i32_93 : i32
    %160 = arith.extui %159 : i1 to i32
    %c0_i32_94 = arith.constant 0 : i32
    %161 = arith.cmpi ne, %160, %c0_i32_94 : i32
    scf.if %161 {
      %c0_95 = arith.constant 0 : index
      %c0_96 = arith.constant 0 : index
      %162 = vector.load %arg13[%c0_95, %c0_96] : memref<8x32xf32, #tpu.memory_space<vmem>>, vector<8x8xf32>
      %c0_97 = arith.constant 0 : index
      %c0_98 = arith.constant 0 : index
      %c0_99 = arith.constant 0 : index
      %163 = vector.load %arg12[%c0_97, %c0_98, %c0_99] : memref<4x8x1xf32, #tpu.memory_space<vmem>>, vector<1x8x1xf32>
      %164 = vector.shape_cast %163 : vector<1x8x1xf32> to vector<8x1xf32>
      %cst_100 = arith.constant 1.000000e+00 : f32
      %165 = vector.broadcast %cst_100 : f32 to vector<8x1xf32>
      %166 = arith.divf %165, %164 : vector<8x1xf32>
      %167 = vector.broadcast %166 : vector<8x1xf32> to vector<8x8xf32>
      %168 = arith.mulf %162, %167 : vector<8x8xf32>
      %c0_101 = arith.constant 0 : index
      %c0_102 = arith.constant 0 : index
      %169 = vector.load %arg13[%c0_101, %c0_102] : memref<8x32xf32, #tpu.memory_space<vmem>>, vector<8x8xf32>
      tpu.vector_store %arg13[%c0_101, %c0_102], %168 {strides = array<i32>} : memref<8x32xf32, #tpu.memory_space<vmem>>, vector<8x8xf32>,
      %c0_103 = arith.constant 0 : index
      %c8_104 = arith.constant 8 : index
      %170 = vector.load %arg13[%c0_103, %c8_104] : memref<8x32xf32, #tpu.memory_space<vmem>>, vector<8x8xf32>
      %c1_105 = arith.constant 1 : index
      %c0_106 = arith.constant 0 : index
      %c0_107 = arith.constant 0 : index
      %171 = vector.load %arg12[%c1_105, %c0_106, %c0_107] : memref<4x8x1xf32, #tpu.memory_space<vmem>>, vector<1x8x1xf32>
      %172 = vector.shape_cast %171 : vector<1x8x1xf32> to vector<8x1xf32>
      %cst_108 = arith.constant 1.000000e+00 : f32
      %173 = vector.broadcast %cst_108 : f32 to vector<8x1xf32>
      %174 = arith.divf %173, %172 : vector<8x1xf32>
      %175 = vector.broadcast %174 : vector<8x1xf32> to vector<8x8xf32>
      %176 = arith.mulf %170, %175 : vector<8x8xf32>
      %c0_109 = arith.constant 0 : index
      %c8_110 = arith.constant 8 : index
      %177 = vector.load %arg13[%c0_109, %c8_110] : memref<8x32xf32, #tpu.memory_space<vmem>>, vector<8x8xf32>
      tpu.vector_store %arg13[%c0_109, %c8_110], %176 {strides = array<i32>} : memref<8x32xf32, #tpu.memory_space<vmem>>, vector<8x8xf32>,
      %c0_111 = arith.constant 0 : index
      %c16_112 = arith.constant 16 : index
      %178 = vector.load %arg13[%c0_111, %c16_112] : memref<8x32xf32, #tpu.memory_space<vmem>>, vector<8x8xf32>
      %c2_113 = arith.constant 2 : index
      %c0_114 = arith.constant 0 : index
      %c0_115 = arith.constant 0 : index
      %179 = vector.load %arg12[%c2_113, %c0_114, %c0_115] : memref<4x8x1xf32, #tpu.memory_space<vmem>>, vector<1x8x1xf32>
      %180 = vector.shape_cast %179 : vector<1x8x1xf32> to vector<8x1xf32>
      %cst_116 = arith.constant 1.000000e+00 : f32
      %181 = vector.broadcast %cst_116 : f32 to vector<8x1xf32>
      %182 = arith.divf %181, %180 : vector<8x1xf32>
      %183 = vector.broadcast %182 : vector<8x1xf32> to vector<8x8xf32>
      %184 = arith.mulf %178, %183 : vector<8x8xf32>
      %c0_117 = arith.constant 0 : index
      %c16_118 = arith.constant 16 : index
      %185 = vector.load %arg13[%c0_117, %c16_118] : memref<8x32xf32, #tpu.memory_space<vmem>>, vector<8x8xf32>
      tpu.vector_store %arg13[%c0_117, %c16_118], %184 {strides = array<i32>} : memref<8x32xf32, #tpu.memory_space<vmem>>, vector<8x8xf32>,
      %c0_119 = arith.constant 0 : index
      %c24_120 = arith.constant 24 : index
      %186 = vector.load %arg13[%c0_119, %c24_120] : memref<8x32xf32, #tpu.memory_space<vmem>>, vector<8x8xf32>
      %c3_121 = arith.constant 3 : index
      %c0_122 = arith.constant 0 : index
      %c0_123 = arith.constant 0 : index
      %187 = vector.load %arg12[%c3_121, %c0_122, %c0_123] : memref<4x8x1xf32, #tpu.memory_space<vmem>>, vector<1x8x1xf32>
      %188 = vector.shape_cast %187 : vector<1x8x1xf32> to vector<8x1xf32>
      %cst_124 = arith.constant 1.000000e+00 : f32
      %189 = vector.broadcast %cst_124 : f32 to vector<8x1xf32>
      %190 = arith.divf %189, %188 : vector<8x1xf32>
      %191 = vector.broadcast %190 : vector<8x1xf32> to vector<8x8xf32>
      %192 = arith.mulf %186, %191 : vector<8x8xf32>
      %c0_125 = arith.constant 0 : index
      %c24_126 = arith.constant 24 : index
      %193 = vector.load %arg13[%c0_125, %c24_126] : memref<8x32xf32, #tpu.memory_space<vmem>>, vector<8x8xf32>
      tpu.vector_store %arg13[%c0_125, %c24_126], %192 {strides = array<i32>} : memref<8x32xf32, #tpu.memory_space<vmem>>, vector<8x8xf32>,
      %c0_127 = arith.constant 0 : index
      %c0_128 = arith.constant 0 : index
      %194 = vector.load %arg13[%c0_127, %c0_128] : memref<8x32xf32, #tpu.memory_space<vmem>>, vector<8x32xf32>
      %195 = arith.truncf %194 : vector<8x32xf32> to vector<8x32xbf16>
      %c0_129 = arith.constant 0 : index
      %c0_130 = arith.constant 0 : index
      %196 = vector.load %arg7[%c0_129, %c0_130] : memref<32x32xf32, #tpu.memory_space<vmem>>, vector<32x32xf32>
      %197 = arith.truncf %196 : vector<32x32xf32> to vector<32x32xbf16>
      %cst_131 = arith.constant dense<0.000000e+00> : vector<8x32xf32>
      %198 = tpu.matmul %195, %197, %cst_131 {dimension_numbers = #tpu.dot_dimension_numbers<[1], [0], [0], [1], [0, 0, 1, 1], [], []>} : vector<8x32xbf16>, vector<32x32xbf16>, vector<8x32xf32> -> vector<8x32xf32>
      %c0_132 = arith.constant 0 : index
      %c0_133 = arith.constant 0 : index
      %199 = vector.load %arg8[%c0_132, %c0_133] : memref<1x32xf32, #tpu.memory_space<vmem>>, vector<1x32xf32>
      %200 = vector.broadcast %199 : vector<1x32xf32> to vector<8x32xf32>
      %201 = arith.addf %198, %200 : vector<8x32xf32>
      %c0_134 = arith.constant 0 : index
      %c0_135 = arith.constant 0 : index
      %c0_136 = arith.constant 0 : index
      %202 = vector.load %arg9[%c0_134, %c0_135, %c0_136] : memref<1x8x32xf32, #tpu.memory_space<vmem>>, vector<1x8x32xf32>
      %203 = vector.shape_cast %202 : vector<1x8x32xf32> to vector<8x32xf32>
      %204 = arith.addf %201, %203 : vector<8x32xf32>
      %c0_137 = arith.constant 0 : index
      %c0_138 = arith.constant 0 : index
      %c0_139 = arith.constant 0 : index
      %205 = vector.load %arg10[%c0_137, %c0_138, %c0_139] : memref<1x8x32xf32, #tpu.memory_space<vmem>>, vector<1x8x32xf32>
      %206 = vector.shape_cast %205 : vector<1x8x32xf32> to vector<8x32xf32>
      %207 = vector.shape_cast %204 : vector<8x32xf32> to vector<1x8x32xf32>
      tpu.vector_store %arg10[%c0_137, %c0_138, %c0_139], %207 {strides = array<i32>} : memref<1x8x32xf32, #tpu.memory_space<vmem>>, vector<1x8x32xf32>,
    } else {
    }
    return
  }
  func.func @transform_0(%arg0: i32, %arg1: i32, %arg2: i32) -> (i32, i32, i32, i32) {
    %c0_i32 = arith.constant 0 : i32
    %c0_i32_0 = arith.constant 0 : i32
    %c0_i32_1 = arith.constant 0 : i32
    return %c0_i32, %arg0, %arg1, %c0_i32_0 : i32, i32, i32, i32
  }
  func.func @transform_1(%arg0: i32, %arg1: i32, %arg2: i32) -> (i32, i32, i32, i32) {
    %c1_i32 = arith.constant 1 : i32
    %c0_i32 = arith.constant 0 : i32
    %c0_i32_0 = arith.constant 0 : i32
    return %c1_i32, %arg0, %arg2, %c0_i32 : i32, i32, i32, i32
  }
  func.func @transform_2(%arg0: i32, %arg1: i32, %arg2: i32) -> (i32, i32, i32, i32) {
    %c2_i32 = arith.constant 2 : i32
    %c0_i32 = arith.constant 0 : i32
    %c0_i32_0 = arith.constant 0 : i32
    return %c2_i32, %arg0, %arg2, %c0_i32 : i32, i32, i32, i32
  }
  func.func @transform_3(%arg0: i32, %arg1: i32, %arg2: i32) -> (i32, i32, i32, i32) {
    %c0_i32 = arith.constant 0 : i32
    %c0_i32_0 = arith.constant 0 : i32
    return %arg0, %c0_i32, %arg1, %arg2 : i32, i32, i32, i32
  }
  func.func @transform_4(%arg0: i32, %arg1: i32, %arg2: i32) -> (i32, i32) {
    %c0_i32 = arith.constant 0 : i32
    %c0_i32_0 = arith.constant 0 : i32
    %c0_i32_1 = arith.constant 0 : i32
    return %c0_i32, %c0_i32_0 : i32, i32
  }
  func.func @transform_5(%arg0: i32, %arg1: i32, %arg2: i32) -> (i32, i32) {
    %c0_i32 = arith.constant 0 : i32
    %c0_i32_0 = arith.constant 0 : i32
    %c0_i32_1 = arith.constant 0 : i32
    return %c0_i32, %c0_i32_0 : i32, i32
  }
  func.func @transform_6(%arg0: i32, %arg1: i32, %arg2: i32) -> (i32, i32, i32) {
    %c0_i32 = arith.constant 0 : i32
    %c0_i32_0 = arith.constant 0 : i32
    return %arg0, %arg1, %c0_i32 : i32, i32, i32
  }
  func.func @transform_7(%arg0: i32, %arg1: i32, %arg2: i32) -> (i32, i32, i32) {
    %c0_i32 = arith.constant 0 : i32
    %c0_i32_0 = arith.constant 0 : i32
    return %arg0, %arg1, %c0_i32 : i32, i32, i32
  }
}

module attributes {stable_mosaic.version = 11 : i64} {
  func.func @_ln_ffn_kernel(%arg0: i32, %arg1: i32, %arg2: memref<16x32xf32, #tpu.memory_space<vmem>>, %arg3: memref<1x32xf32, #tpu.memory_space<vmem>>, %arg4: memref<1x32xf32, #tpu.memory_space<vmem>>, %arg5: memref<32x64xf32, #tpu.memory_space<vmem>>, %arg6: memref<1x64xf32, #tpu.memory_space<vmem>>, %arg7: memref<64x32xf32, #tpu.memory_space<vmem>>, %arg8: memref<1x32xf32, #tpu.memory_space<vmem>>, %arg9: memref<16x32xf32, #tpu.memory_space<vmem>>, %arg10: memref<16x32xbf16, #tpu.memory_space<vmem>>, %arg11: memref<16x32xf32, #tpu.memory_space<vmem>>) attributes {dimension_semantics = [#tpu.dimension_semantics<parallel>, #tpu.dimension_semantics<arbitrary>], iteration_bounds = array<i64: 1, 1>, scalar_prefetch = 0 : i64, scratch_operands = 2 : i64, tpu.core_type = #tpu.core_type<tc>, window_params = [{transform_indices = @transform_0, window_bounds = array<i64: 16, 32>}, {pipeline_mode = #tpu.pipeline_mode<synchronous>, transform_indices = @transform_1, window_bounds = array<i64: 1, 32>}, {pipeline_mode = #tpu.pipeline_mode<synchronous>, transform_indices = @transform_2, window_bounds = array<i64: 1, 32>}, {transform_indices = @transform_3, window_bounds = array<i64: 32, 64>}, {transform_indices = @transform_4, window_bounds = array<i64: 1, 64>}, {transform_indices = @transform_5, window_bounds = array<i64: 64, 32>}, {pipeline_mode = #tpu.pipeline_mode<synchronous>, transform_indices = @transform_6, window_bounds = array<i64: 1, 32>}, {transform_indices = @transform_7, window_bounds = array<i64: 16, 32>}]} {
    %c0_i32 = arith.constant 0 : i32
    %0 = arith.cmpi eq, %arg1, %c0_i32 : i32
    %1 = arith.extui %0 : i1 to i32
    %c0_i32_0 = arith.constant 0 : i32
    %2 = arith.cmpi ne, %1, %c0_i32_0 : i32
    scf.if %2 {
      %c0_16 = arith.constant 0 : index
      %c0_17 = arith.constant 0 : index
      %22 = vector.load %arg2[%c0_16, %c0_17] : memref<16x32xf32, #tpu.memory_space<vmem>>, vector<16x32xf32>
      %c0_18 = arith.constant 0 : index
      %c0_19 = arith.constant 0 : index
      %23 = vector.load %arg3[%c0_18, %c0_19] : memref<1x32xf32, #tpu.memory_space<vmem>>, vector<1x32xf32>
      %c0_20 = arith.constant 0 : index
      %c0_21 = arith.constant 0 : index
      %24 = vector.load %arg4[%c0_20, %c0_21] : memref<1x32xf32, #tpu.memory_space<vmem>>, vector<1x32xf32>
      %cst_22 = arith.constant dense<0.000000e+00> : vector<16xf32>
      %25 = vector.multi_reduction <add>, %22, %cst_22 [1] : vector<16x32xf32> to vector<16xf32>
      %26 = vector.shape_cast %25 : vector<16xf32> to vector<16x1xf32>
      %cst_23 = arith.constant 3.200000e+01 : f32
      %27 = vector.broadcast %cst_23 : f32 to vector<16x1xf32>
      %28 = arith.divf %26, %27 : vector<16x1xf32>
      %29 = vector.broadcast %28 : vector<16x1xf32> to vector<16x32xf32>
      %30 = arith.subf %22, %29 : vector<16x32xf32>
      %31 = arith.mulf %30, %30 : vector<16x32xf32>
      %cst_24 = arith.constant dense<0.000000e+00> : vector<16xf32>
      %32 = vector.multi_reduction <add>, %31, %cst_24 [1] : vector<16x32xf32> to vector<16xf32>
      %33 = vector.shape_cast %32 : vector<16xf32> to vector<16x1xf32>
      %cst_25 = arith.constant 3.200000e+01 : f32
      %34 = vector.broadcast %cst_25 : f32 to vector<16x1xf32>
      %35 = arith.divf %33, %34 : vector<16x1xf32>
      %36 = vector.broadcast %28 : vector<16x1xf32> to vector<16x32xf32>
      %37 = arith.subf %22, %36 : vector<16x32xf32>
      %cst_26 = arith.constant 9.99999974E-6 : f32
      %38 = vector.broadcast %cst_26 : f32 to vector<16x1xf32>
      %39 = arith.addf %35, %38 : vector<16x1xf32>
      %40 = math.rsqrt %39 : vector<16x1xf32>
      %41 = vector.broadcast %40 : vector<16x1xf32> to vector<16x32xf32>
      %42 = arith.mulf %37, %41 : vector<16x32xf32>
      %43 = vector.broadcast %23 : vector<1x32xf32> to vector<16x32xf32>
      %44 = arith.mulf %42, %43 : vector<16x32xf32>
      %45 = vector.broadcast %24 : vector<1x32xf32> to vector<16x32xf32>
      %46 = arith.addf %44, %45 : vector<16x32xf32>
      %47 = arith.truncf %46 : vector<16x32xf32> to vector<16x32xbf16>
      %c0_27 = arith.constant 0 : index
      %c0_28 = arith.constant 0 : index
      %48 = vector.load %arg10[%c0_27, %c0_28] : memref<16x32xbf16, #tpu.memory_space<vmem>>, vector<16x32xbf16>
      tpu.vector_store %arg10[%c0_27, %c0_28], %47 {strides = array<i32>} : memref<16x32xbf16, #tpu.memory_space<vmem>>, vector<16x32xbf16>,
      %c0_29 = arith.constant 0 : index
      %c0_30 = arith.constant 0 : index
      %49 = vector.load %arg2[%c0_29, %c0_30] : memref<16x32xf32, #tpu.memory_space<vmem>>, vector<16x32xf32>
      %c0_31 = arith.constant 0 : index
      %c0_32 = arith.constant 0 : index
      %50 = vector.load %arg8[%c0_31, %c0_32] : memref<1x32xf32, #tpu.memory_space<vmem>>, vector<1x32xf32>
      %51 = vector.broadcast %50 : vector<1x32xf32> to vector<16x32xf32>
      %52 = arith.addf %49, %51 : vector<16x32xf32>
      %c0_33 = arith.constant 0 : index
      %c0_34 = arith.constant 0 : index
      %53 = vector.load %arg11[%c0_33, %c0_34] : memref<16x32xf32, #tpu.memory_space<vmem>>, vector<16x32xf32>
      tpu.vector_store %arg11[%c0_33, %c0_34], %52 {strides = array<i32>} : memref<16x32xf32, #tpu.memory_space<vmem>>, vector<16x32xf32>,
    } else {
    }
    %c0 = arith.constant 0 : index
    %c0_1 = arith.constant 0 : index
    %3 = vector.load %arg10[%c0, %c0_1] : memref<16x32xbf16, #tpu.memory_space<vmem>>, vector<16x32xbf16>
    %c0_2 = arith.constant 0 : index
    %c0_3 = arith.constant 0 : index
    %4 = vector.load %arg5[%c0_2, %c0_3] : memref<32x64xf32, #tpu.memory_space<vmem>>, vector<32x64xf32>
    %5 = arith.truncf %4 : vector<32x64xf32> to vector<32x64xbf16>
    %cst = arith.constant dense<0.000000e+00> : vector<16x64xf32>
    %6 = tpu.matmul %3, %5, %cst {dimension_numbers = #tpu.dot_dimension_numbers<[1], [0], [0], [1], [0, 0, 1, 1], [], []>} : vector<16x32xbf16>, vector<32x64xbf16>, vector<16x64xf32> -> vector<16x64xf32>
    %c0_4 = arith.constant 0 : index
    %c0_5 = arith.constant 0 : index
    %7 = vector.load %arg6[%c0_4, %c0_5] : memref<1x64xf32, #tpu.memory_space<vmem>>, vector<1x64xf32>
    %8 = vector.broadcast %7 : vector<1x64xf32> to vector<16x64xf32>
    %9 = arith.addf %6, %8 : vector<16x64xf32>
    %cst_6 = arith.constant 0.000000e+00 : f32
    %10 = vector.broadcast %cst_6 : f32 to vector<16x64xf32>
    %11 = arith.maximumf %9, %10 : vector<16x64xf32>
    %12 = arith.truncf %11 : vector<16x64xf32> to vector<16x64xbf16>
    %c0_7 = arith.constant 0 : index
    %c0_8 = arith.constant 0 : index
    %13 = vector.load %arg11[%c0_7, %c0_8] : memref<16x32xf32, #tpu.memory_space<vmem>>, vector<16x32xf32>
    %c0_9 = arith.constant 0 : index
    %c0_10 = arith.constant 0 : index
    %14 = vector.load %arg7[%c0_9, %c0_10] : memref<64x32xf32, #tpu.memory_space<vmem>>, vector<64x32xf32>
    %15 = arith.truncf %14 : vector<64x32xf32> to vector<64x32xbf16>
    %cst_11 = arith.constant dense<0.000000e+00> : vector<16x32xf32>
    %16 = tpu.matmul %12, %15, %cst_11 {dimension_numbers = #tpu.dot_dimension_numbers<[1], [0], [0], [1], [0, 0, 1, 1], [], []>} : vector<16x64xbf16>, vector<64x32xbf16>, vector<16x32xf32> -> vector<16x32xf32>
    %17 = arith.addf %13, %16 : vector<16x32xf32>
    %c0_12 = arith.constant 0 : index
    %c0_13 = arith.constant 0 : index
    %18 = vector.load %arg11[%c0_12, %c0_13] : memref<16x32xf32, #tpu.memory_space<vmem>>, vector<16x32xf32>
    tpu.vector_store %arg11[%c0_12, %c0_13], %17 {strides = array<i32>} : memref<16x32xf32, #tpu.memory_space<vmem>>, vector<16x32xf32>,
    %c0_i32_14 = arith.constant 0 : i32
    %19 = arith.cmpi eq, %arg1, %c0_i32_14 : i32
    %20 = arith.extui %19 : i1 to i32
    %c0_i32_15 = arith.constant 0 : i32
    %21 = arith.cmpi ne, %20, %c0_i32_15 : i32
    scf.if %21 {
      %c0_16 = arith.constant 0 : index
      %c0_17 = arith.constant 0 : index
      %22 = vector.load %arg11[%c0_16, %c0_17] : memref<16x32xf32, #tpu.memory_space<vmem>>, vector<16x32xf32>
      %c0_18 = arith.constant 0 : index
      %c0_19 = arith.constant 0 : index
      %23 = vector.load %arg9[%c0_18, %c0_19] : memref<16x32xf32, #tpu.memory_space<vmem>>, vector<16x32xf32>
      tpu.vector_store %arg9[%c0_18, %c0_19], %22 {strides = array<i32>} : memref<16x32xf32, #tpu.memory_space<vmem>>, vector<16x32xf32>,
    } else {
    }
    return
  }
  func.func @transform_0(%arg0: i32, %arg1: i32) -> (i32, i32) {
    %c0_i32 = arith.constant 0 : i32
    %c0_i32_0 = arith.constant 0 : i32
    return %arg0, %c0_i32 : i32, i32
  }
  func.func @transform_1(%arg0: i32, %arg1: i32) -> (i32, i32) {
    %c0_i32 = arith.constant 0 : i32
    %c0_i32_0 = arith.constant 0 : i32
    %c0_i32_1 = arith.constant 0 : i32
    return %c0_i32, %c0_i32_0 : i32, i32
  }
  func.func @transform_2(%arg0: i32, %arg1: i32) -> (i32, i32) {
    %c0_i32 = arith.constant 0 : i32
    %c0_i32_0 = arith.constant 0 : i32
    %c0_i32_1 = arith.constant 0 : i32
    return %c0_i32, %c0_i32_0 : i32, i32
  }
  func.func @transform_3(%arg0: i32, %arg1: i32) -> (i32, i32) {
    %c0_i32 = arith.constant 0 : i32
    %c0_i32_0 = arith.constant 0 : i32
    return %c0_i32, %arg1 : i32, i32
  }
  func.func @transform_4(%arg0: i32, %arg1: i32) -> (i32, i32) {
    %c0_i32 = arith.constant 0 : i32
    %c0_i32_0 = arith.constant 0 : i32
    return %c0_i32, %arg1 : i32, i32
  }
  func.func @transform_5(%arg0: i32, %arg1: i32) -> (i32, i32) {
    %c0_i32 = arith.constant 0 : i32
    %c0_i32_0 = arith.constant 0 : i32
    return %arg1, %c0_i32 : i32, i32
  }
  func.func @transform_6(%arg0: i32, %arg1: i32) -> (i32, i32) {
    %c0_i32 = arith.constant 0 : i32
    %c0_i32_0 = arith.constant 0 : i32
    %c0_i32_1 = arith.constant 0 : i32
    return %c0_i32, %c0_i32_0 : i32, i32
  }
  func.func @transform_7(%arg0: i32, %arg1: i32) -> (i32, i32) {
    %c0_i32 = arith.constant 0 : i32
    %c0_i32_0 = arith.constant 0 : i32
    return %arg0, %c0_i32 : i32, i32
  }
}

module attributes {stable_mosaic.version = 11 : i64} {
  func.func @_ln_qkv_kernel(%arg0: i32, %arg1: memref<16x32xf32, #tpu.memory_space<vmem>>, %arg2: memref<1x32xf32, #tpu.memory_space<vmem>>, %arg3: memref<1x32xf32, #tpu.memory_space<vmem>>, %arg4: memref<3x32x32xf32, #tpu.memory_space<vmem>>, %arg5: memref<3x1x32xf32, #tpu.memory_space<vmem>>, %arg6: memref<3x16x32xf32, #tpu.memory_space<vmem>>) attributes {dimension_semantics = [#tpu.dimension_semantics<parallel>], iteration_bounds = array<i64: 1>, scalar_prefetch = 0 : i64, scratch_operands = 0 : i64, tpu.core_type = #tpu.core_type<tc>, window_params = [{transform_indices = @transform_0, window_bounds = array<i64: 16, 32>}, {pipeline_mode = #tpu.pipeline_mode<synchronous>, transform_indices = @transform_1, window_bounds = array<i64: 1, 32>}, {pipeline_mode = #tpu.pipeline_mode<synchronous>, transform_indices = @transform_2, window_bounds = array<i64: 1, 32>}, {pipeline_mode = #tpu.pipeline_mode<synchronous>, transform_indices = @transform_3, window_bounds = array<i64: 3, 32, 32>}, {pipeline_mode = #tpu.pipeline_mode<synchronous>, transform_indices = @transform_4, window_bounds = array<i64: 3, 1, 32>}, {transform_indices = @transform_5, window_bounds = array<i64: 3, 16, 32>}]} {
    %c0 = arith.constant 0 : index
    %c0_0 = arith.constant 0 : index
    %0 = vector.load %arg1[%c0, %c0_0] : memref<16x32xf32, #tpu.memory_space<vmem>>, vector<16x32xf32>
    %c0_1 = arith.constant 0 : index
    %c0_2 = arith.constant 0 : index
    %1 = vector.load %arg2[%c0_1, %c0_2] : memref<1x32xf32, #tpu.memory_space<vmem>>, vector<1x32xf32>
    %c0_3 = arith.constant 0 : index
    %c0_4 = arith.constant 0 : index
    %2 = vector.load %arg3[%c0_3, %c0_4] : memref<1x32xf32, #tpu.memory_space<vmem>>, vector<1x32xf32>
    %cst = arith.constant dense<0.000000e+00> : vector<16xf32>
    %3 = vector.multi_reduction <add>, %0, %cst [1] : vector<16x32xf32> to vector<16xf32>
    %4 = vector.shape_cast %3 : vector<16xf32> to vector<16x1xf32>
    %cst_5 = arith.constant 3.200000e+01 : f32
    %5 = vector.broadcast %cst_5 : f32 to vector<16x1xf32>
    %6 = arith.divf %4, %5 : vector<16x1xf32>
    %7 = vector.broadcast %6 : vector<16x1xf32> to vector<16x32xf32>
    %8 = arith.subf %0, %7 : vector<16x32xf32>
    %9 = arith.mulf %8, %8 : vector<16x32xf32>
    %cst_6 = arith.constant dense<0.000000e+00> : vector<16xf32>
    %10 = vector.multi_reduction <add>, %9, %cst_6 [1] : vector<16x32xf32> to vector<16xf32>
    %11 = vector.shape_cast %10 : vector<16xf32> to vector<16x1xf32>
    %cst_7 = arith.constant 3.200000e+01 : f32
    %12 = vector.broadcast %cst_7 : f32 to vector<16x1xf32>
    %13 = arith.divf %11, %12 : vector<16x1xf32>
    %14 = vector.broadcast %6 : vector<16x1xf32> to vector<16x32xf32>
    %15 = arith.subf %0, %14 : vector<16x32xf32>
    %cst_8 = arith.constant 9.99999974E-6 : f32
    %16 = vector.broadcast %cst_8 : f32 to vector<16x1xf32>
    %17 = arith.addf %13, %16 : vector<16x1xf32>
    %18 = math.rsqrt %17 : vector<16x1xf32>
    %19 = vector.broadcast %18 : vector<16x1xf32> to vector<16x32xf32>
    %20 = arith.mulf %15, %19 : vector<16x32xf32>
    %21 = vector.broadcast %1 : vector<1x32xf32> to vector<16x32xf32>
    %22 = arith.mulf %20, %21 : vector<16x32xf32>
    %23 = vector.broadcast %2 : vector<1x32xf32> to vector<16x32xf32>
    %24 = arith.addf %22, %23 : vector<16x32xf32>
    %25 = arith.truncf %24 : vector<16x32xf32> to vector<16x32xbf16>
    %c0_9 = arith.constant 0 : index
    %c0_10 = arith.constant 0 : index
    %c0_11 = arith.constant 0 : index
    %26 = vector.load %arg4[%c0_9, %c0_10, %c0_11] : memref<3x32x32xf32, #tpu.memory_space<vmem>>, vector<1x32x32xf32>
    %27 = vector.shape_cast %26 : vector<1x32x32xf32> to vector<32x32xf32>
    %28 = arith.truncf %27 : vector<32x32xf32> to vector<32x32xbf16>
    %cst_12 = arith.constant dense<0.000000e+00> : vector<16x32xf32>
    %29 = tpu.matmul %25, %28, %cst_12 {dimension_numbers = #tpu.dot_dimension_numbers<[1], [0], [0], [1], [0, 0, 1, 1], [], []>} : vector<16x32xbf16>, vector<32x32xbf16>, vector<16x32xf32> -> vector<16x32xf32>
    %c0_13 = arith.constant 0 : index
    %c0_14 = arith.constant 0 : index
    %c0_15 = arith.constant 0 : index
    %30 = vector.load %arg5[%c0_13, %c0_14, %c0_15] : memref<3x1x32xf32, #tpu.memory_space<vmem>>, vector<1x1x32xf32>
    %31 = vector.shape_cast %30 : vector<1x1x32xf32> to vector<1x32xf32>
    %32 = vector.broadcast %31 : vector<1x32xf32> to vector<16x32xf32>
    %33 = arith.addf %29, %32 : vector<16x32xf32>
    %c0_16 = arith.constant 0 : index
    %c0_17 = arith.constant 0 : index
    %c0_18 = arith.constant 0 : index
    %34 = vector.load %arg6[%c0_16, %c0_17, %c0_18] : memref<3x16x32xf32, #tpu.memory_space<vmem>>, vector<1x16x32xf32>
    %35 = vector.shape_cast %34 : vector<1x16x32xf32> to vector<16x32xf32>
    %36 = vector.shape_cast %33 : vector<16x32xf32> to vector<1x16x32xf32>
    tpu.vector_store %arg6[%c0_16, %c0_17, %c0_18], %36 {strides = array<i32>} : memref<3x16x32xf32, #tpu.memory_space<vmem>>, vector<1x16x32xf32>,
    %c1 = arith.constant 1 : index
    %c0_19 = arith.constant 0 : index
    %c0_20 = arith.constant 0 : index
    %37 = vector.load %arg4[%c1, %c0_19, %c0_20] : memref<3x32x32xf32, #tpu.memory_space<vmem>>, vector<1x32x32xf32>
    %38 = vector.shape_cast %37 : vector<1x32x32xf32> to vector<32x32xf32>
    %39 = arith.truncf %38 : vector<32x32xf32> to vector<32x32xbf16>
    %cst_21 = arith.constant dense<0.000000e+00> : vector<16x32xf32>
    %40 = tpu.matmul %25, %39, %cst_21 {dimension_numbers = #tpu.dot_dimension_numbers<[1], [0], [0], [1], [0, 0, 1, 1], [], []>} : vector<16x32xbf16>, vector<32x32xbf16>, vector<16x32xf32> -> vector<16x32xf32>
    %c1_22 = arith.constant 1 : index
    %c0_23 = arith.constant 0 : index
    %c0_24 = arith.constant 0 : index
    %41 = vector.load %arg5[%c1_22, %c0_23, %c0_24] : memref<3x1x32xf32, #tpu.memory_space<vmem>>, vector<1x1x32xf32>
    %42 = vector.shape_cast %41 : vector<1x1x32xf32> to vector<1x32xf32>
    %43 = vector.broadcast %42 : vector<1x32xf32> to vector<16x32xf32>
    %44 = arith.addf %40, %43 : vector<16x32xf32>
    %c1_25 = arith.constant 1 : index
    %c0_26 = arith.constant 0 : index
    %c0_27 = arith.constant 0 : index
    %45 = vector.load %arg6[%c1_25, %c0_26, %c0_27] : memref<3x16x32xf32, #tpu.memory_space<vmem>>, vector<1x16x32xf32>
    %46 = vector.shape_cast %45 : vector<1x16x32xf32> to vector<16x32xf32>
    %47 = vector.shape_cast %44 : vector<16x32xf32> to vector<1x16x32xf32>
    tpu.vector_store %arg6[%c1_25, %c0_26, %c0_27], %47 {strides = array<i32>} : memref<3x16x32xf32, #tpu.memory_space<vmem>>, vector<1x16x32xf32>,
    %c2 = arith.constant 2 : index
    %c0_28 = arith.constant 0 : index
    %c0_29 = arith.constant 0 : index
    %48 = vector.load %arg4[%c2, %c0_28, %c0_29] : memref<3x32x32xf32, #tpu.memory_space<vmem>>, vector<1x32x32xf32>
    %49 = vector.shape_cast %48 : vector<1x32x32xf32> to vector<32x32xf32>
    %50 = arith.truncf %49 : vector<32x32xf32> to vector<32x32xbf16>
    %cst_30 = arith.constant dense<0.000000e+00> : vector<16x32xf32>
    %51 = tpu.matmul %25, %50, %cst_30 {dimension_numbers = #tpu.dot_dimension_numbers<[1], [0], [0], [1], [0, 0, 1, 1], [], []>} : vector<16x32xbf16>, vector<32x32xbf16>, vector<16x32xf32> -> vector<16x32xf32>
    %c2_31 = arith.constant 2 : index
    %c0_32 = arith.constant 0 : index
    %c0_33 = arith.constant 0 : index
    %52 = vector.load %arg5[%c2_31, %c0_32, %c0_33] : memref<3x1x32xf32, #tpu.memory_space<vmem>>, vector<1x1x32xf32>
    %53 = vector.shape_cast %52 : vector<1x1x32xf32> to vector<1x32xf32>
    %54 = vector.broadcast %53 : vector<1x32xf32> to vector<16x32xf32>
    %55 = arith.addf %51, %54 : vector<16x32xf32>
    %c2_34 = arith.constant 2 : index
    %c0_35 = arith.constant 0 : index
    %c0_36 = arith.constant 0 : index
    %56 = vector.load %arg6[%c2_34, %c0_35, %c0_36] : memref<3x16x32xf32, #tpu.memory_space<vmem>>, vector<1x16x32xf32>
    %57 = vector.shape_cast %56 : vector<1x16x32xf32> to vector<16x32xf32>
    %58 = vector.shape_cast %55 : vector<16x32xf32> to vector<1x16x32xf32>
    tpu.vector_store %arg6[%c2_34, %c0_35, %c0_36], %58 {strides = array<i32>} : memref<3x16x32xf32, #tpu.memory_space<vmem>>, vector<1x16x32xf32>,
    return
  }
  func.func @transform_0(%arg0: i32) -> (i32, i32) {
    %c0_i32 = arith.constant 0 : i32
    %c0_i32_0 = arith.constant 0 : i32
    return %arg0, %c0_i32 : i32, i32
  }
  func.func @transform_1(%arg0: i32) -> (i32, i32) {
    %c0_i32 = arith.constant 0 : i32
    %c0_i32_0 = arith.constant 0 : i32
    %c0_i32_1 = arith.constant 0 : i32
    return %c0_i32, %c0_i32_0 : i32, i32
  }
  func.func @transform_2(%arg0: i32) -> (i32, i32) {
    %c0_i32 = arith.constant 0 : i32
    %c0_i32_0 = arith.constant 0 : i32
    %c0_i32_1 = arith.constant 0 : i32
    return %c0_i32, %c0_i32_0 : i32, i32
  }
  func.func @transform_3(%arg0: i32) -> (i32, i32, i32) {
    %c0_i32 = arith.constant 0 : i32
    %c0_i32_0 = arith.constant 0 : i32
    %c0_i32_1 = arith.constant 0 : i32
    %c0_i32_2 = arith.constant 0 : i32
    return %c0_i32, %c0_i32_0, %c0_i32_1 : i32, i32, i32
  }
  func.func @transform_4(%arg0: i32) -> (i32, i32, i32) {
    %c0_i32 = arith.constant 0 : i32
    %c0_i32_0 = arith.constant 0 : i32
    %c0_i32_1 = arith.constant 0 : i32
    %c0_i32_2 = arith.constant 0 : i32
    return %c0_i32, %c0_i32_0, %c0_i32_1 : i32, i32, i32
  }
  func.func @transform_5(%arg0: i32) -> (i32, i32, i32) {
    %c0_i32 = arith.constant 0 : i32
    %c0_i32_0 = arith.constant 0 : i32
    %c0_i32_1 = arith.constant 0 : i32
    return %c0_i32, %arg0, %c0_i32_0 : i32, i32, i32
  }
}

module attributes {stable_mosaic.version = 11 : i64} {
  func.func @_ln_kernel(%arg0: i32, %arg1: memref<16x32xf32, #tpu.memory_space<vmem>>, %arg2: memref<1x32xf32, #tpu.memory_space<vmem>>, %arg3: memref<1x32xf32, #tpu.memory_space<vmem>>, %arg4: memref<16x32xf32, #tpu.memory_space<vmem>>) attributes {dimension_semantics = [#tpu.dimension_semantics<parallel>], iteration_bounds = array<i64: 1>, scalar_prefetch = 0 : i64, scratch_operands = 0 : i64, tpu.core_type = #tpu.core_type<tc>, window_params = [{transform_indices = @transform_0, window_bounds = array<i64: 16, 32>}, {pipeline_mode = #tpu.pipeline_mode<synchronous>, transform_indices = @transform_1, window_bounds = array<i64: 1, 32>}, {pipeline_mode = #tpu.pipeline_mode<synchronous>, transform_indices = @transform_2, window_bounds = array<i64: 1, 32>}, {transform_indices = @transform_3, window_bounds = array<i64: 16, 32>}]} {
    %c0 = arith.constant 0 : index
    %c0_0 = arith.constant 0 : index
    %0 = vector.load %arg1[%c0, %c0_0] : memref<16x32xf32, #tpu.memory_space<vmem>>, vector<16x32xf32>
    %c0_1 = arith.constant 0 : index
    %c0_2 = arith.constant 0 : index
    %1 = vector.load %arg2[%c0_1, %c0_2] : memref<1x32xf32, #tpu.memory_space<vmem>>, vector<1x32xf32>
    %c0_3 = arith.constant 0 : index
    %c0_4 = arith.constant 0 : index
    %2 = vector.load %arg3[%c0_3, %c0_4] : memref<1x32xf32, #tpu.memory_space<vmem>>, vector<1x32xf32>
    %cst = arith.constant dense<0.000000e+00> : vector<16xf32>
    %3 = vector.multi_reduction <add>, %0, %cst [1] : vector<16x32xf32> to vector<16xf32>
    %4 = vector.shape_cast %3 : vector<16xf32> to vector<16x1xf32>
    %cst_5 = arith.constant 3.200000e+01 : f32
    %5 = vector.broadcast %cst_5 : f32 to vector<16x1xf32>
    %6 = arith.divf %4, %5 : vector<16x1xf32>
    %7 = vector.broadcast %6 : vector<16x1xf32> to vector<16x32xf32>
    %8 = arith.subf %0, %7 : vector<16x32xf32>
    %9 = arith.mulf %8, %8 : vector<16x32xf32>
    %cst_6 = arith.constant dense<0.000000e+00> : vector<16xf32>
    %10 = vector.multi_reduction <add>, %9, %cst_6 [1] : vector<16x32xf32> to vector<16xf32>
    %11 = vector.shape_cast %10 : vector<16xf32> to vector<16x1xf32>
    %cst_7 = arith.constant 3.200000e+01 : f32
    %12 = vector.broadcast %cst_7 : f32 to vector<16x1xf32>
    %13 = arith.divf %11, %12 : vector<16x1xf32>
    %14 = vector.broadcast %6 : vector<16x1xf32> to vector<16x32xf32>
    %15 = arith.subf %0, %14 : vector<16x32xf32>
    %cst_8 = arith.constant 9.99999974E-6 : f32
    %16 = vector.broadcast %cst_8 : f32 to vector<16x1xf32>
    %17 = arith.addf %13, %16 : vector<16x1xf32>
    %18 = math.rsqrt %17 : vector<16x1xf32>
    %19 = vector.broadcast %18 : vector<16x1xf32> to vector<16x32xf32>
    %20 = arith.mulf %15, %19 : vector<16x32xf32>
    %21 = vector.broadcast %1 : vector<1x32xf32> to vector<16x32xf32>
    %22 = arith.mulf %20, %21 : vector<16x32xf32>
    %23 = vector.broadcast %2 : vector<1x32xf32> to vector<16x32xf32>
    %24 = arith.addf %22, %23 : vector<16x32xf32>
    %c0_9 = arith.constant 0 : index
    %c0_10 = arith.constant 0 : index
    %25 = vector.load %arg4[%c0_9, %c0_10] : memref<16x32xf32, #tpu.memory_space<vmem>>, vector<16x32xf32>
    tpu.vector_store %arg4[%c0_9, %c0_10], %24 {strides = array<i32>} : memref<16x32xf32, #tpu.memory_space<vmem>>, vector<16x32xf32>,
    return
  }
  func.func @transform_0(%arg0: i32) -> (i32, i32) {
    %c0_i32 = arith.constant 0 : i32
    %c0_i32_0 = arith.constant 0 : i32
    return %arg0, %c0_i32 : i32, i32
  }
  func.func @transform_1(%arg0: i32) -> (i32, i32) {
    %c0_i32 = arith.constant 0 : i32
    %c0_i32_0 = arith.constant 0 : i32
    %c0_i32_1 = arith.constant 0 : i32
    return %c0_i32, %c0_i32_0 : i32, i32
  }
  func.func @transform_2(%arg0: i32) -> (i32, i32) {
    %c0_i32 = arith.constant 0 : i32
    %c0_i32_0 = arith.constant 0 : i32
    %c0_i32_1 = arith.constant 0 : i32
    return %c0_i32, %c0_i32_0 : i32, i32
  }
  func.func @transform_3(%arg0: i32) -> (i32, i32) {
    %c0_i32 = arith.constant 0 : i32
    %c0_i32_0 = arith.constant 0 : i32
    return %arg0, %c0_i32 : i32, i32
  }
}

</mosaic_0001>

<bundles_post_ra>
// kernel: attention_block.7
= control target key start
LH: loop header
LB: loop body
LE: loop exit
PB: predicated region body
PF: predicated region fallthrough
CT: control target
= control target key end

     0   :  { %10 = vsyncpa [#allocation3], 0  ;;  %s246_s21 = smov [#allocation2]   ;;  %s247_s23 = smov 128   ;;  %s335_s0 = inlined_call_operand.vmem [shape: f32[16,32], index: 0, kind: input, shape index: {}]   ;;  %s336_s1 = inlined_call_operand.vmem [shape: f32[1,32], index: 1, kind: input, shape index: {}]   ;;  %s337_s2 = inlined_call_operand.vmem [shape: f32[1,32], index: 2, kind: input, shape index: {}]   ;;  %s338_s3 = inlined_call_operand.hbm [shape: f32[3,32,32], index: 3, kind: input, shape index: {}]   ;;  %s339_s4 = inlined_call_operand.vmem [shape: f32[3,1,32], index: 4, kind: input, shape index: {}]   ;;  %s340_s5 = inlined_call_operand.vmem [shape: f32[3,16,32], index: 5, kind: output, shape index: {}]  }
   0x1   :  { %s21_s20 = sshll.u32 %s338_s3, 4  ;;  %s23_s22 = sshll.u32 %s246_s21, 4  ;;  %s22_s20 = int_to_ptr.hbm [resolvable:$true] %s21_s20  ;;  %s24_s22 = int_to_ptr.vmem [resolvable:$true] %s23_s22 }
   0x2   :  { %s248_s24 = smov 8  }
   0x3   :  { %29 = dma.hbm_to_vmem [thread:$0]  %s22_s20, 1536, %s24_s22, [#allocation3], %s247_s23, %s247_s23, %s248_s24  }
   0x4   :  { %244 = dma.done.wait [#allocation3], 1536  }
   0x5   :  { %245 = vsyncadd [#allocation3], 4294965760  ;;  %vm41_vm0 = vcmask 261120   ;;  %v37_v0 = vld [vmem:[%s335_s0] sm:$0xff]  ;;  %v38_v2 = vld [vmem:[%s335_s0 + $0x8] sm:$0xff]  ;;  %v249_v4 = vmov 32.0  }
   0x6   :  { %v42_v1 = vsel %vm41_vm0, %v37_v0, 0.0  ;;  %v45_v3 = vsel %vm41_vm0, %v38_v2, 0.0  ;;  %214 = vrcp.f32 %v249_v4  ;;  %v106_v21 = vld [vmem:[#allocation2 + $0x10] sm:$0xff]  ;;  %v107_v22 = vld [vmem:[#allocation2 + $0x18] sm:$0xff]  ;;  %v104_v30 = vld [vmem:[#allocation2] sm:$0xff] }
   0x7   :  { %43 = vadd.xlane.f32.xlu0 %v42_v1  ;;  %v136_v23 = vld [vmem:[#allocation2 + $0x30] sm:$0xff]  ;;  %v109_v24 = vpack.c.bf16 %v107_v22, %v106_v21  ;;  %v137_v25 = vld [vmem:[#allocation2 + $0x38] sm:$0xff]  ;;  %v105_v31 = vld [vmem:[#allocation2 + $0x8] sm:$0xff] }
   0x8   :  { %v165_v26 = vld [vmem:[#allocation2 + $0x50] sm:$0xff]  ;;  %v166_v27 = vld [vmem:[#allocation2 + $0x58] sm:$0xff]  ;;  %v139_v28 = vpack.c.bf16 %v137_v25, %v136_v23  ;;  %v134_v32 = vld [vmem:[#allocation2 + $0x20] sm:$0xff]  ;;  %v108_v34 = vpack.c.bf16 %v105_v31, %v104_v30 }
   0x9   :  { %v168_v29 = vpack.c.bf16 %v166_v27, %v165_v26  ;;  %123 = vmatpush.bf16.msra.mxu0 %v109_v24  ;;  %v135_v35 = vld [vmem:[#allocation2 + $0x28] sm:$0xff]  ;;  %v163_v36 = vld [vmem:[#allocation2 + $0x40] sm:$0xff] }
   0xa   :  { %v164_v37 = vld [vmem:[#allocation2 + $0x48] sm:$0xff]  ;;  %151 = vmatpush.bf16.msra.mxu1 %v139_v28  ;;  %v138_v39 = vpack.c.bf16 %v135_v35, %v134_v32  ;;  %v209_v58 = vld [vmem:[%s336_s1] ss:$0 sm:$0xff] }
   0xb   :  { %180 = vmatpush.bf16.msra.mxu2 %v168_v29  ;;  %v167_v40 = vpack.c.bf16 %v164_v37, %v163_v36  ;;  %v210_v63 = vld [vmem:[%s337_s2] ss:$0 sm:$0xff] }
   0xc   :  { %v215_v5 = vpop.eup %214  ;;  %v211_v4 = vld [vmem:[%s339_s4] ss:$0 sm:$0xff] }
   0xd   :  { %v49_v6 = vmul.f32 32.0, %v215_v5  ;;  %vm53_vm1 = vweird.f32 %v215_v5  ;;  %124 = vmatpush.bf16.msra.mxu0 %v108_v34 }
   0xe   :  { %152 = vmatpush.bf16.msra.mxu1 %v138_v39 }
   0xf   :  { %46 = vadd.xlane.f32.xlu0 %v45_v3  ;;  %v50_v7 = vsub.f32 1.0, %v49_v6  ;;  %181 = vmatpush.bf16.msra.mxu2 %v167_v40 }
  0x11   :  { %v51_v8 = vmul.f32 %v215_v5, %v50_v7 }
  0x13   :  { %v52_v9 = vadd.f32 %v215_v5, %v51_v8 }
  0x15   :  { %v54_v10 = vsel %vm53_vm1, %v215_v5, %v52_v9  ;;  %v212_v5 = vld [vmem:[%s339_s4 + $0x1] ss:$0 sm:$0xff] }
  0x7a   :  { %v44_v11 = vpop.xlane.xlu0 %43 }
  0x7b   :  { %v55_v12 = vmul.f32 %v54_v10, %v44_v11 }
  0x7d   :  { %v57_v13 = vsub.f32 %v37_v0, %v55_v12 }
  0x7f   :  { %v59_v14 = vmul.f32 %v57_v13, %v57_v13 }
  0x81   :  { %v61_v15 = vsel %vm41_vm0, %v59_v14, 0.0 }
  0x82   :  { %62 = vadd.xlane.f32.xlu1 %v61_v15  ;;  %v47_v16 = vpop.xlane.xlu0 %46 }
  0x83   :  { %v56_v17 = vmul.f32 %v54_v10, %v47_v16 }
  0x85   :  { %v58_v18 = vsub.f32 %v38_v2, %v56_v17 }
  0x87   :  { %v60_v19 = vmul.f32 %v58_v18, %v58_v18 }
  0x89   :  { %v64_v20 = vsel %vm41_vm0, %v60_v19, 0.0 }
  0x8a   :  { %65 = vadd.xlane.f32.xlu1 %v64_v20 }
  0xf5   :  { %v63_v33 = vpop.xlane.xlu1 %62 }
  0xf6   :  { %v67_v38 = vmul.f32 %v63_v33, %v54_v10 }
  0xf8   :  { %v69_v41 = vadd.f32 1e-05, %v67_v38 }
  0xfa   :  { %216 = vrsqrt.f32 %v69_v41  ;;  %vm77_vm3 = vweird.f32 %v69_v41 }
  0xfd   :  { %v66_v42 = vpop.xlane.xlu1 %65 }
  0xfe   :  { %v68_v43 = vmul.f32 %v66_v42, %v54_v10  ;;  %v213_v10 = vld [vmem:[%s339_s4 + $0x2] ss:$0 sm:$0xff] }
 0x100   :  { %v217_v44 = vpop.eup %216  ;;  %v70_v45 = vadd.f32 1e-05, %v68_v43 }
 0x101   :  { %v72_v46 = vmul.f32 %v217_v44, %v69_v41  ;;  %vm78_vm2 = vweird.f32 %v217_v44 }
 0x102   :  { %218 = vrsqrt.f32 %v70_v45  ;;  %vm79_vm4 = vmor %vm77_vm3, %vm78_vm2  ;;  %vm87_vm6 = vweird.f32 %v70_v45 }
 0x103   :  { %v73_v47 = vmul.f32 %v217_v44, %v72_v46 }
 0x105   :  { %v74_v48 = vmul.f32 0.5, %v73_v47 }
 0x107   :  { %v75_v49 = vsub.f32 1.5, %v74_v48 }
 0x108   :  { %v219_v50 = vpop.eup %218 }
 0x109   :  { %v76_v51 = vmul.f32 %v217_v44, %v75_v49  ;;  %v82_v52 = vmul.f32 %v219_v50, %v70_v45  ;;  %vm88_vm5 = vweird.f32 %v219_v50 }
 0x10a   :  { %vm89_vm7 = vmor %vm87_vm6, %vm88_vm5 }
 0x10b   :  { %v83_v53 = vmul.f32 %v219_v50, %v82_v52  ;;  %v80_v54 = vsel %vm79_vm4, %v217_v44, %v76_v51 }
 0x10c   :  { %v91_v57 = vmul.f32 %v80_v54, %v57_v13 }
 0x10d   :  { %v84_v55 = vmul.f32 0.5, %v83_v53 }
 0x10e   :  { %v96_v62 = vmul.f32 %v209_v58, %v91_v57 }
 0x10f   :  { %v85_v56 = vsub.f32 1.5, %v84_v55 }
 0x110   :  { %v101_v1 = vadd.f32 %v210_v63, %v96_v62 }
 0x111   :  { %v86_v59 = vmul.f32 %v219_v50, %v85_v56 }
 0x113   :  { %v90_v60 = vsel %vm89_vm7, %v219_v50, %v86_v59 }
 0x114   :  { %v92_v61 = vmul.f32 %v90_v60, %v58_v18 }
 0x116   :  { %v97_v0 = vmul.f32 %v209_v58, %v92_v61 }
 0x118   :  { %v102_v2 = vadd.f32 %v210_v63, %v97_v0 }
 0x11a   :  { %v103_v3 = vpack.c.bf16 %v102_v2, %v101_v1 }
 0x11c   :  { %196 = vmatmul.msk.bf16.vlgmr.msra.gmra.mxu0 %vm41_vm0, %v103_v3  ;;  %198 = vmatmul.msk.bf16.vlgmr.msra.gmra.mxu1 %vm41_vm0, %v103_v3 }
 0x11d   :  { %202 = vmatmul.msk.bf16.vlgmr.msra.gmra.mxu2 %vm41_vm0, %v103_v3 }
 0x199   :  { %v126_v6 = vpop.f32.mrf.mxu0  ;;  %v154_v7 = vpop.f32.mrf.mxu1 }
 0x19a   :  { %v127_v8 = vadd.f32 %v211_v4, %v126_v6  ;;  %v155_v9 = vadd.f32 %v212_v5, %v154_v7 }
 0x19c   :  { %131 = vst.msk [vmem:[%s340_s5] sm:$0xff] %vm41_vm0, %v127_v8 }
 0x19d   :  { %199 = vst.msk [vmem:[%s340_s5 + $0x10] sm:$0xff] %vm41_vm0, %v155_v9 }
 0x1a0   :  { %v183_v11 = vpop.f32.mrf.mxu2 }
 0x1a1   :  { %v184_v12 = vadd.f32 %v213_v10, %v183_v11  ;;  %v128_v13 = vpop.f32.mrf.mxu0  ;;  %v156_v14 = vpop.f32.mrf.mxu1 }
 0x1a2   :  { %v129_v15 = vadd.f32 %v211_v4, %v128_v13  ;;  %v157_v16 = vadd.f32 %v212_v5, %v156_v14 }
 0x1a3   :  { %203 = vst.msk [vmem:[%s340_s5 + $0x20] sm:$0xff] %vm41_vm0, %v184_v12 }
 0x1a4   :  { %132 = vst.msk [vmem:[%s340_s5 + $0x8] sm:$0xff] %vm41_vm0, %v129_v15 }
 0x1a5   :  { %200 = vst.msk [vmem:[%s340_s5 + $0x18] sm:$0xff] %vm41_vm0, %v157_v16 }
 0x1a8   :  { %v185_v17 = vpop.f32.mrf.mxu2 }
 0x1a9   :  { %v186_v18 = vadd.f32 %v213_v10, %v185_v17 }
 0x1ab   :  { %204 = vst.msk [vmem:[%s340_s5 + $0x28] sm:$0xff] %vm41_vm0, %v186_v18 }
 0x1ac   :  { %195 = vsyncpa [#allocation3], 1 }

// kernel: attention_block.9
= control target key start
LH: loop header
LB: loop body
LE: loop exit
PB: predicated region body
PF: predicated region fallthrough
CT: control target
= control target key end

     0   :  { %vm35_vm0 = vcmask 261120   ;;  %v215_v7 = vmov 32.0   ;;  %vm99_vm6 = vcmask 257024   ;;  %vm164_vm9 = vcmask 523264   ;;  %s327_s0 = inlined_call_operand.vmem [shape: f32[16,32], index: 0, kind: input, shape index: {}]   ;;  %s328_s6 = inlined_call_operand.vmem [shape: f32[1,32], index: 6, kind: input, shape index: {}]   ;;  %s329_s1 = inlined_call_operand.vmem [shape: f32[1,32], index: 1, kind: input, shape index: {}]   ;;  %s330_s2 = inlined_call_operand.vmem [shape: f32[1,32], index: 2, kind: input, shape index: {}]   ;;  %s331_s4 = inlined_call_operand.vmem [shape: f32[1,64], index: 4, kind: input, shape index: {}]   ;;  %s332_s3 = inlined_call_operand.vmem [shape: f32[32,64], index: 3, kind: input, shape index: {}]   ;;  %s333_s5 = inlined_call_operand.vmem [shape: f32[64,32], index: 5, kind: input, shape index: {}]   ;;  %s334_s7 = inlined_call_operand.vmem [shape: f32[16,32], index: 7, kind: output, shape index: {}]  }
   0x1   :  { %v31_v0 = vld [vmem:[%s327_s0] sm:$0xff]  ;;  %v103_v3 = vld [vmem:[%s327_s0 + $0x8] sm:$0xff]  ;;  %209 = vrcp.f32 %v215_v7  ;;  %v116_v27 = vld [vmem:[%s332_s3 + $0x10] sm:$0xff] }
   0x2   :  { %v36_v1 = vsel %vm35_vm0, %v31_v0, 0.0  ;;  %v205_v2 = vld [vmem:[%s328_s6] ss:$0 sm:$0xff]  ;;  %v39_v6 = vsel %vm35_vm0, %v103_v3, 0.0  ;;  %v117_v28 = vld [vmem:[%s332_s3 + $0x18] sm:$0xff]  ;;  %v115_v31 = vld [vmem:[%s332_s3 + $0x8] sm:$0xff] }
   0x3   :  { %37 = vadd.xlane.f32.xlu0 %v36_v1  ;;  %v108_v4 = vadd.f32 %v205_v2, %v31_v0  ;;  %v109_v5 = vadd.f32 %v205_v2, %v103_v3  ;;  %v119_v29 = vpack.c.bf16 %v117_v28, %v116_v27  ;;  %v114_v30 = vld [vmem:[%s332_s3] sm:$0xff]  ;;  %v158_v61 = vld [vmem:[%s333_s5 + $0x30] sm:$0xff]  ;;  %v159_v62 = vld [vmem:[%s333_s5 + $0x38] sm:$0xff] }
   0x4   :  { %v118_v34 = vpack.c.bf16 %v115_v31, %v114_v30  ;;  %v206_v44 = vld [vmem:[%s329_s1] ss:$0 sm:$0xff]  ;;  %v163_v63 = vpack.c.bf16 %v159_v62, %v158_v61  ;;  %v157_v1 = vld [vmem:[%s333_s5 + $0x28] sm:$0xff] }
   0x5   :  { %110 = vst.msk [vmem:[#allocation3] sm:$0xff] %vm35_vm0, %v108_v4  ;;  %139 = vmatpush.bf16.msra.mxu0 %v119_v29  ;;  %v207_v47 = vld [vmem:[%s330_s2] ss:$0 sm:$0xff]  ;;  %v155_v4 = vld [vmem:[%s333_s5 + $0x18] sm:$0xff]  ;;  %v153_v7 = vld [vmem:[%s333_s5 + $0x8] sm:$0xff] }
   0x6   :  { %111 = vst.msk [vmem:[#allocation3 + $0x8] sm:$0xff] %vm35_vm0, %v109_v5  ;;  %172 = vmatpush.bf16.msra.mxu1 %v163_v63 }
   0x7   :  { %v210_v8 = vpop.eup %209 }
   0x8   :  { %v43_v9 = vmul.f32 32.0, %v210_v8  ;;  %vm47_vm1 = vweird.f32 %v210_v8 }
   0x9   :  { %140 = vmatpush.bf16.msra.mxu0 %v118_v34 }
   0xa   :  { %v44_v10 = vsub.f32 1.0, %v43_v9 }
   0xb   :  { %40 = vadd.xlane.f32.xlu0 %v39_v6  ;;  %v152_v6 = vld [vmem:[%s333_s5] sm:$0xff] }
   0xc   :  { %v45_v11 = vmul.f32 %v210_v8, %v44_v10  ;;  %v208_v10 = vld [vmem:[%s331_s4] ss:$0 sm:$0xff] }
   0xe   :  { %v46_v12 = vadd.f32 %v210_v8, %v45_v11 }
  0x10   :  { %v48_v13 = vsel %vm47_vm1, %v210_v8, %v46_v12  ;;  %v160_v8 = vpack.c.bf16 %v153_v7, %v152_v6 }
  0x76   :  { %v38_v14 = vpop.xlane.xlu0 %37 }
  0x77   :  { %v49_v15 = vmul.f32 %v48_v13, %v38_v14 }
  0x79   :  { %v51_v16 = vsub.f32 %v31_v0, %v49_v15  ;;  %v156_v0 = vld [vmem:[%s333_s5 + $0x20] sm:$0xff] }
  0x7a   :  { %v162_v2 = vpack.c.bf16 %v157_v1, %v156_v0 }
  0x7b   :  { %v53_v17 = vmul.f32 %v51_v16, %v51_v16 }
  0x7c   :  { %173 = vmatpush.bf16.msra.mxu1 %v162_v2 }
  0x7d   :  { %v55_v18 = vsel %vm35_vm0, %v53_v17, 0.0  ;;  %v150_v17 = vld [vmem:[#allocation3] sm:$0xff] }
  0x7e   :  { %56 = vadd.xlane.f32.xlu1 %v55_v18  ;;  %v41_v19 = vpop.xlane.xlu0 %40 }
  0x7f   :  { %v50_v20 = vmul.f32 %v48_v13, %v41_v19 }
  0x81   :  { %v52_v21 = vsub.f32 %v103_v3, %v50_v20  ;;  %v154_v3 = vld [vmem:[%s333_s5 + $0x10] sm:$0xff] }
  0x82   :  { %v161_v5 = vpack.c.bf16 %v155_v4, %v154_v3  ;;  %v151_v20 = vld [vmem:[#allocation3 + $0x8] sm:$0xff] }
  0x83   :  { %v54_v22 = vmul.f32 %v52_v21, %v52_v21 }
  0x84   :  { %174 = vmatpush.bf16.msra.mxu1 %v161_v5 }
  0x85   :  { %v58_v23 = vsel %vm35_vm0, %v54_v22, 0.0 }
  0x86   :  { %59 = vadd.xlane.f32.xlu1 %v58_v23 }
  0x88   :  { %175 = vmatpush.bf16.msra.mxu1 %v160_v8 }
  0xf1   :  { %v57_v24 = vpop.xlane.xlu1 %56 }
  0xf2   :  { %v61_v25 = vmul.f32 %v57_v24, %v48_v13 }
  0xf4   :  { %v63_v26 = vadd.f32 1e-05, %v61_v25 }
  0xf6   :  { %211 = vrsqrt.f32 %v63_v26  ;;  %vm71_vm3 = vweird.f32 %v63_v26 }
  0xf9   :  { %v60_v32 = vpop.xlane.xlu1 %59 }
  0xfa   :  { %v62_v33 = vmul.f32 %v60_v32, %v48_v13 }
  0xfc   :  { %v212_v35 = vpop.eup %211  ;;  %v64_v36 = vadd.f32 1e-05, %v62_v33 }
  0xfd   :  { %v66_v37 = vmul.f32 %v212_v35, %v63_v26  ;;  %vm72_vm2 = vweird.f32 %v212_v35 }
  0xfe   :  { %213 = vrsqrt.f32 %v64_v36  ;;  %vm73_vm4 = vmor %vm71_vm3, %vm72_vm2  ;;  %vm81_vm7 = vweird.f32 %v64_v36 }
  0xff   :  { %v67_v38 = vmul.f32 %v212_v35, %v66_v37 }
 0x101   :  { %v68_v39 = vmul.f32 0.5, %v67_v38 }
 0x103   :  { %v69_v40 = vsub.f32 1.5, %v68_v39 }
 0x104   :  { %v214_v41 = vpop.eup %213 }
 0x105   :  { %v70_v42 = vmul.f32 %v212_v35, %v69_v40  ;;  %v76_v43 = vmul.f32 %v214_v41, %v64_v36  ;;  %vm82_vm5 = vweird.f32 %v214_v41 }
 0x106   :  { %vm83_vm8 = vmor %vm81_vm7, %vm82_vm5 }
 0x107   :  { %v74_v45 = vsel %vm73_vm4, %v212_v35, %v70_v42  ;;  %v77_v46 = vmul.f32 %v214_v41, %v76_v43 }
 0x108   :  { %v85_v48 = vmul.f32 %v74_v45, %v51_v16 }
 0x109   :  { %v78_v49 = vmul.f32 0.5, %v77_v46 }
 0x10a   :  { %v90_v50 = vmul.f32 %v206_v44, %v85_v48 }
 0x10b   :  { %v79_v51 = vsub.f32 1.5, %v78_v49 }
 0x10c   :  { %v95_v52 = vadd.f32 %v207_v47, %v90_v50 }
 0x10d   :  { %v80_v53 = vmul.f32 %v214_v41, %v79_v51 }
 0x10e   :  { %v97_v54 = vpack.c.bf16 %v95_v52, %v95_v52 }
 0x10f   :  { %v84_v55 = vsel %vm83_vm8, %v214_v41, %v80_v53 }
 0x110   :  { %100 = vst.msk [vmem:[#allocation2] sm:$0xf] %vm99_vm6, %v97_v54  ;;  %v86_v56 = vmul.f32 %v84_v55, %v52_v21 }
 0x112   :  { %v91_v57 = vmul.f32 %v206_v44, %v86_v56 }
 0x114   :  { %v96_v58 = vadd.f32 %v207_v47, %v91_v57 }
 0x116   :  { %v98_v59 = vpack.c.bf16 %v96_v58, %v96_v58 }
 0x118   :  { %101 = vst.msk [vmem:[#allocation2 + $0x4] sm:$0xf] %vm99_vm6, %v98_v59 }
 0x11f   :  { %v203_v60 = vld [vmem:[#allocation2] sm:$0xff] }
 0x120   :  { %201 = vmatmul.msk.bf16.vlgmr.msra.gmra.mxu0 %vm35_vm0, %v203_v60 }
 0x19d   :  { %v142_v9 = vpop.f32.mrf.mxu0 }
 0x19e   :  { %v143_v11 = vadd.f32 %v208_v10, %v142_v9 }
 0x1a0   :  { %v147_v14 = vmax.f32 %v143_v11, 0.0 }
 0x1a5   :  { %v144_v12 = vpop.f32.mrf.mxu0 }
 0x1a6   :  { %v145_v13 = vadd.f32 %v208_v10, %v144_v12 }
 0x1a8   :  { %v148_v15 = vmax.f32 %v145_v13, 0.0 }
 0x1aa   :  { %v149_v16 = vpack.c.bf16 %v148_v15, %v147_v14 }
 0x1ac   :  { %202 = vmatmul.msk.bf16.vlgmr.msra.gmra.mxu1 %vm164_vm9, %v149_v16 }
 0x229   :  { %v177_v18 = vpop.f32.mrf.mxu1 }
 0x22a   :  { %v182_v19 = vadd.f32 %v177_v18, %v150_v17 }
 0x22c   :  { %184 = vst.msk [vmem:[#allocation3] sm:$0xff] %vm35_vm0, %v182_v19 }
 0x231   :  { %v179_v21 = vpop.f32.mrf.mxu1 }
 0x232   :  { %v183_v22 = vadd.f32 %v179_v21, %v151_v20 }
 0x233   :  { %v189_v23 = vld [vmem:[#allocation3] sm:$0xff] }
 0x234   :  { %191 = vst.msk [vmem:[%s334_s7] sm:$0xff] %vm35_vm0, %v189_v23 }
 0x235   :  { %185 = vst.msk [vmem:[#allocation3 + $0x8] sm:$0xff] %vm35_vm0, %v183_v22 }
 0x23c   :  { %v190_v24 = vld [vmem:[#allocation3 + $0x8] sm:$0xff] }
 0x23d   :  { %192 = vst.msk [vmem:[%s334_s7 + $0x8] sm:$0xff] %vm35_vm0, %v190_v24 }

// kernel: attention_block.10
= control target key start
LH: loop header
LB: loop body
LE: loop exit
PB: predicated region body
PF: predicated region fallthrough
CT: control target
= control target key end

     0   :  { %vm25_vm0 = vcmask 261120   ;;  %v208_v4 = vmov 32.0   ;;  %s332_s0 = inlined_call_operand.vmem [shape: f32[16,32], index: 0, kind: input, shape index: {}]   ;;  %s333_s1 = inlined_call_operand.vmem [shape: f32[1,32], index: 1, kind: input, shape index: {}]   ;;  %s334_s2 = inlined_call_operand.vmem [shape: f32[1,32], index: 2, kind: input, shape index: {}]   ;;  %s335_s4 = inlined_call_operand.vmem [shape: f32[3,1,32], index: 4, kind: input, shape index: {}]   ;;  %s336_s3 = inlined_call_operand.vmem [shape: f32[3,32,32], index: 3, kind: input, shape index: {}]   ;;  %s337_s5 = inlined_call_operand.vmem [shape: f32[3,16,32], index: 5, kind: output, shape index: {}]  }
   0x1   :  { %v21_v0 = vld [vmem:[%s332_s0] sm:$0xff]  ;;  %v22_v2 = vld [vmem:[%s332_s0 + $0x8] sm:$0xff]  ;;  %202 = vrcp.f32 %v208_v4  ;;  %v90_v21 = vld [vmem:[%s336_s3 + $0x10] sm:$0xff] }
   0x2   :  { %v26_v1 = vsel %vm25_vm0, %v21_v0, 0.0  ;;  %v29_v3 = vsel %vm25_vm0, %v22_v2, 0.0  ;;  %v91_v22 = vld [vmem:[%s336_s3 + $0x18] sm:$0xff]  ;;  %v182_v23 = vld [vmem:[%s336_s3 + $0x30] sm:$0xff]  ;;  %v88_v30 = vld [vmem:[%s336_s3] sm:$0xff] }
   0x3   :  { %27 = vadd.xlane.f32.xlu0 %v26_v1  ;;  %v93_v24 = vpack.c.bf16 %v91_v22, %v90_v21  ;;  %v183_v25 = vld [vmem:[%s336_s3 + $0x38] sm:$0xff]  ;;  %v190_v26 = vld [vmem:[%s336_s3 + $0x50] sm:$0xff]  ;;  %v89_v31 = vld [vmem:[%s336_s3 + $0x8] sm:$0xff] }
   0x4   :  { %v191_v27 = vld [vmem:[%s336_s3 + $0x58] sm:$0xff]  ;;  %v123_v28 = vpack.c.bf16 %v183_v25, %v182_v23  ;;  %v180_v32 = vld [vmem:[%s336_s3 + $0x20] sm:$0xff]  ;;  %v92_v34 = vpack.c.bf16 %v89_v31, %v88_v30  ;;  %v181_v35 = vld [vmem:[%s336_s3 + $0x28] sm:$0xff] }
   0x5   :  { %v152_v29 = vpack.c.bf16 %v191_v27, %v190_v26  ;;  %107 = vmatpush.bf16.msra.mxu0 %v93_v24  ;;  %v188_v36 = vld [vmem:[%s336_s3 + $0x40] sm:$0xff]  ;;  %v189_v37 = vld [vmem:[%s336_s3 + $0x48] sm:$0xff]  ;;  %v122_v39 = vpack.c.bf16 %v181_v35, %v180_v32 }
   0x6   :  { %135 = vmatpush.bf16.msra.mxu1 %v123_v28  ;;  %v151_v40 = vpack.c.bf16 %v189_v37, %v188_v36  ;;  %v197_v58 = vld [vmem:[%s333_s1] ss:$0 sm:$0xff] }
   0x7   :  { %v203_v5 = vpop.eup %202  ;;  %164 = vmatpush.bf16.msra.mxu2 %v152_v29  ;;  %v198_v63 = vld [vmem:[%s334_s2] ss:$0 sm:$0xff] }
   0x8   :  { %v33_v6 = vmul.f32 32.0, %v203_v5  ;;  %vm37_vm1 = vweird.f32 %v203_v5  ;;  %v199_v4 = vld [vmem:[%s335_s4] ss:$0 sm:$0xff] }
   0x9   :  { %108 = vmatpush.bf16.msra.mxu0 %v92_v34 }
   0xa   :  { %v34_v7 = vsub.f32 1.0, %v33_v6  ;;  %136 = vmatpush.bf16.msra.mxu1 %v122_v39 }
   0xb   :  { %30 = vadd.xlane.f32.xlu0 %v29_v3  ;;  %165 = vmatpush.bf16.msra.mxu2 %v151_v40 }
   0xc   :  { %v35_v8 = vmul.f32 %v203_v5, %v34_v7 }
   0xe   :  { %v36_v9 = vadd.f32 %v203_v5, %v35_v8 }
  0x10   :  { %v38_v10 = vsel %vm37_vm1, %v203_v5, %v36_v9  ;;  %v200_v5 = vld [vmem:[%s335_s4 + $0x1] ss:$0 sm:$0xff] }
  0x76   :  { %v28_v11 = vpop.xlane.xlu0 %27 }
  0x77   :  { %v39_v12 = vmul.f32 %v38_v10, %v28_v11 }
  0x79   :  { %v41_v13 = vsub.f32 %v21_v0, %v39_v12 }
  0x7b   :  { %v43_v14 = vmul.f32 %v41_v13, %v41_v13 }
  0x7d   :  { %v45_v15 = vsel %vm25_vm0, %v43_v14, 0.0 }
  0x7e   :  { %46 = vadd.xlane.f32.xlu1 %v45_v15  ;;  %v31_v16 = vpop.xlane.xlu0 %30 }
  0x7f   :  { %v40_v17 = vmul.f32 %v38_v10, %v31_v16 }
  0x81   :  { %v248_v18 = vsub.f32 %v22_v2, %v40_v17 }
  0x83   :  { %v44_v19 = vmul.f32 %v248_v18, %v248_v18 }
  0x85   :  { %v48_v20 = vsel %vm25_vm0, %v44_v19, 0.0 }
  0x86   :  { %49 = vadd.xlane.f32.xlu1 %v48_v20 }
  0xf1   :  { %v47_v33 = vpop.xlane.xlu1 %46 }
  0xf2   :  { %v51_v38 = vmul.f32 %v47_v33, %v38_v10 }
  0xf4   :  { %v53_v41 = vadd.f32 1e-05, %v51_v38 }
  0xf6   :  { %204 = vrsqrt.f32 %v53_v41  ;;  %vm61_vm3 = vweird.f32 %v53_v41 }
  0xf9   :  { %v50_v42 = vpop.xlane.xlu1 %49 }
  0xfa   :  { %v52_v43 = vmul.f32 %v50_v42, %v38_v10  ;;  %v201_v10 = vld [vmem:[%s335_s4 + $0x2] ss:$0 sm:$0xff] }
  0xfc   :  { %v205_v44 = vpop.eup %204  ;;  %v54_v45 = vadd.f32 1e-05, %v52_v43 }
  0xfd   :  { %v56_v46 = vmul.f32 %v205_v44, %v53_v41  ;;  %vm62_vm2 = vweird.f32 %v205_v44 }
  0xfe   :  { %206 = vrsqrt.f32 %v54_v45  ;;  %vm63_vm4 = vmor %vm61_vm3, %vm62_vm2  ;;  %vm71_vm6 = vweird.f32 %v54_v45 }
  0xff   :  { %v57_v47 = vmul.f32 %v205_v44, %v56_v46 }
 0x101   :  { %v58_v48 = vmul.f32 0.5, %v57_v47 }
 0x103   :  { %v59_v49 = vsub.f32 1.5, %v58_v48 }
 0x104   :  { %v207_v50 = vpop.eup %206 }
 0x105   :  { %v60_v51 = vmul.f32 %v205_v44, %v59_v49  ;;  %v66_v52 = vmul.f32 %v207_v50, %v54_v45  ;;  %vm72_vm5 = vweird.f32 %v207_v50 }
 0x106   :  { %vm73_vm7 = vmor %vm71_vm6, %vm72_vm5 }
 0x107   :  { %v67_v53 = vmul.f32 %v207_v50, %v66_v52  ;;  %v64_v54 = vsel %vm63_vm4, %v205_v44, %v60_v51 }
 0x108   :  { %v75_v57 = vmul.f32 %v64_v54, %v41_v13 }
 0x109   :  { %v68_v55 = vmul.f32 0.5, %v67_v53 }
 0x10a   :  { %v80_v62 = vmul.f32 %v197_v58, %v75_v57 }
 0x10b   :  { %v69_v56 = vsub.f32 1.5, %v68_v55 }
 0x10c   :  { %v85_v1 = vadd.f32 %v198_v63, %v80_v62 }
 0x10d   :  { %v70_v59 = vmul.f32 %v207_v50, %v69_v56 }
 0x10f   :  { %v74_v60 = vsel %vm73_vm7, %v207_v50, %v70_v59 }
 0x110   :  { %v76_v61 = vmul.f32 %v74_v60, %v248_v18 }
 0x112   :  { %v81_v0 = vmul.f32 %v197_v58, %v76_v61 }
 0x114   :  { %v86_v2 = vadd.f32 %v198_v63, %v81_v0 }
 0x116   :  { %v87_v3 = vpack.c.bf16 %v86_v2, %v85_v1 }
 0x118   :  { %179 = vmatmul.msk.bf16.vlgmr.msra.gmra.mxu0 %vm25_vm0, %v87_v3  ;;  %185 = vmatmul.msk.bf16.vlgmr.msra.gmra.mxu1 %vm25_vm0, %v87_v3 }
 0x119   :  { %193 = vmatmul.msk.bf16.vlgmr.msra.gmra.mxu2 %vm25_vm0, %v87_v3 }
 0x195   :  { %v110_v6 = vpop.f32.mrf.mxu0  ;;  %v138_v7 = vpop.f32.mrf.mxu1 }
 0x196   :  { %v111_v8 = vadd.f32 %v199_v4, %v110_v6  ;;  %v139_v9 = vadd.f32 %v200_v5, %v138_v7 }
 0x198   :  { %115 = vst.msk [vmem:[%s337_s5] sm:$0xff] %vm25_vm0, %v111_v8 }
 0x199   :  { %186 = vst.msk [vmem:[%s337_s5 + $0x10] sm:$0xff] %vm25_vm0, %v139_v9 }
 0x19c   :  { %v167_v11 = vpop.f32.mrf.mxu2 }
 0x19d   :  { %v168_v12 = vadd.f32 %v201_v10, %v167_v11  ;;  %v112_v13 = vpop.f32.mrf.mxu0  ;;  %v140_v14 = vpop.f32.mrf.mxu1 }
 0x19e   :  { %v113_v15 = vadd.f32 %v199_v4, %v112_v13  ;;  %v141_v16 = vadd.f32 %v200_v5, %v140_v14 }
 0x19f   :  { %194 = vst.msk [vmem:[%s337_s5 + $0x20] sm:$0xff] %vm25_vm0, %v168_v12 }
 0x1a0   :  { %116 = vst.msk [vmem:[%s337_s5 + $0x8] sm:$0xff] %vm25_vm0, %v113_v15 }
 0x1a1   :  { %187 = vst.msk [vmem:[%s337_s5 + $0x18] sm:$0xff] %vm25_vm0, %v141_v16 }
 0x1a4   :  { %v169_v17 = vpop.f32.mrf.mxu2 }
 0x1a5   :  { %v170_v18 = vadd.f32 %v201_v10, %v169_v17 }
 0x1a7   :  { %195 = vst.msk [vmem:[%s337_s5 + $0x28] sm:$0xff] %vm25_vm0, %v170_v18 }

// kernel: attention_block.8
= control target key start
LH: loop header
LB: loop body
LE: loop exit
PB: predicated region body
PF: predicated region fallthrough
CT: control target
= control target key end

     0   :  { %s1247_s24 = smov 0   ;;  %s1249_s25 = smov 0   ;;  %s1420_s0 = inlined_call_operand.vmem [shape: f32[3,2,8,32], index: 0, kind: input, shape index: {}, may-alias: {0,1,2}]   ;;  %s1421_s1 = inlined_call_operand.vmem [shape: f32[3,2,8,32], index: 1, kind: input, shape index: {}, may-alias: {0,1,2}]   ;;  %s1422_s2 = inlined_call_operand.vmem [shape: f32[3,2,8,32], index: 2, kind: input, shape index: {}, may-alias: {0,1,2}]   ;;  %s1423_s3 = inlined_call_operand.vmem [shape: bf16[2,1,8,8], index: 3, kind: input, shape index: {}]   ;;  %s1424_s4 = inlined_call_operand.vmem [shape: f32[32,32], index: 4, kind: input, shape index: {}]   ;;  %s1425_s5 = inlined_call_operand.vmem [shape: f32[1,32], index: 5, kind: input, shape index: {}]   ;;  %s1426_s6 = inlined_call_operand.vmem [shape: f32[2,8,32], index: 6, kind: input, shape index: {}]   ;;  %s1427_s7 = inlined_call_operand.vmem [shape: f32[2,8,32], index: 7, kind: output, shape index: {}]  }
   0x1   :  { %s1251_s26 = smov 0  }
   0x2 LB: > { %s36_s27 = sadd.s32 1, %s1192_s25  ;;  %p1093_p0 = scmp.ge.s32.totalorder %s1196_s26, 1  ;;  %s1196_s26 = sphi %s1251_s26, %s17_s26   ;;  %s1192_s25 = sphi %s1249_s25, %s1429_s25   ;;  %s1188_s24 = sphi %s1247_s24, %s1428_s24  }
   0x3   : > { %p38_p1 = scmp.ge.s32.totalorder %s36_s27, 2  ;;  %p325_p2 = scmp.lt.s32.totalorder %s1196_s26, 3 }
   0x5   : > { %s1431_s27 = smov (%p38_p1, %s36_s27), 0  ;;  %p326_p3 = pnand %p1093_p0, %p325_p2 }
   0x6   : > { %p394_p4 = scmp.lt.s32.totalorder (!%p326_p3), %s1188_s24, 1  ;;  %s1200_s16 = smov (!%p326_p3), 120  }
   0x7   : > { %329 = sbr.rel (%p326_p3) target bundleno = 1217 (0x4c1), region = 48  ;;  %s1201_s17 = smov (!%p326_p3), 112  }
   0x8   : > { %s1203_s18 = smov (!%p326_p3), 104   ;;  %s1204_s22 = smov (!%p326_p3), 8  }
   0x9   : > { %s1205_s23 = smov (!%p326_p3), 16  }
   0xc   : > { %s1433_s24 = smov (!%p394_p4, %s1188_s24), 1  ;;  %vm465_vm0 = vcmask 64512   ;;  %vm446_vm1 = vcmask 7168   ;;  %v1198_v5 = vmov -inf   ;;  %v1199_v15 = vmov 0  }
   0xd   : > { %s1265_s28 = sshll.u32 %s1433_s24, 3  ;;  %447 = vst.msk [vmem:[#allocation2] sm:$0xff] %vm446_vm1, %v1198_v5  ;;  %s1097_s12 = sshll.u32 %s1433_s24, 2  ;;  %1146 = vset.pattern.permute.xlu1 %v1199_v15  ;;  %1147 = vset.pattern.permute.xlu2 %v1199_v15  ;;  %v1202_v16 = vmov 0.0   ;;  %vm522_vm2 = vcmask 1043456   ;;  %vm455_vm3 = vcmask 261120  }
   0xe   : > { %s1012_s8 = scalar_lea.vmem %s1421_s1, %s1265_s28  ;;  %s400_s11 = scalar_lea.vmem %s1420_s0, %s1265_s28  ;;  %448 = vst.msk [vmem:[#allocation2 + $0x8] sm:$0xff] %vm446_vm1, %v1198_v5  ;;  %1148 = vset.pattern.permute.xlu0 %v1199_v15 }
   0xf   : > { %v1100_v0 = vld [vmem:[%s1012_s8 + $0x10] sm:$0xff]  ;;  %v457_v3 = vld [vmem:[%s400_s11] sm:$0xff]  ;;  %449 = vst.msk [vmem:[#allocation2 + $0x10] sm:$0xff] %vm446_vm1, %v1198_v5  ;;  %s426_s15 = scalar_lea.vmem %s1423_s3, %s1097_s12  ;;  %s1016_s21 = scalar_lea.vmem %s1422_s2, %s1265_s28 }
  0x10   : > { %v460_v1 = vpack.c.bf16 %v1100_v0, %v1100_v0  ;;  %v458_v4 = vpack.c.bf16 %v457_v3, %v457_v3  ;;  %450 = vst.msk [vmem:[#allocation2 + $0x18] sm:$0xff] %vm446_vm1, %v1198_v5  ;;  %v463_v6 = vld [vmem:[%s426_s15] sm:$0xf]  ;;  %s1206_s24 = smov 24  }
  0x11   : > { %v1284_v7 = vunpack.c.l.bf16 %v463_v6  ;;  %451 = vst.msk [vmem:[#allocation3] sm:$0xff] %vm446_vm1, %v1202_v16  ;;  %v1101_v25 = vld [vmem:[%s1016_s21 + $0x20] sm:$0xff]  ;;  %s440_s21 = scalar_lea.vmem %s1427_s7, %s1265_s28 }
  0x12   : > { %v470_v2 = vsel %vm465_vm0, %v460_v1, 0  ;;  %v548_v13 = vunpack.c.l.b16 %v460_v1  ;;  %v543_v17 = vunpack.c.l.b16 %v458_v4  ;;  %452 = vst.msk [vmem:[#allocation3 + $0x8] sm:$0xff] %vm446_vm1, %v1202_v16  ;;  %v462_v26 = vpack.c.bf16 %v1101_v25, %v1101_v25 }
  0x13   : > { %479 = vmatpush.bf16.xpose.msra.mxu0 %v470_v2  ;;  %453 = vst.msk [vmem:[#allocation3 + $0x10] sm:$0xff] %vm446_vm1, %v1202_v16 }
  0x14   : > { %v549_v14 = vpack.c.b16 %v548_v13, %v548_v13  ;;  %v544_v18 = vpack.c.b16 %v543_v17, %v543_v17  ;;  %454 = vst.msk [vmem:[#allocation3 + $0x18] sm:$0xff] %vm446_vm1, %v1202_v16  ;;  %v1300_v19 = vld [vmem:[#allocation2] sm:$0xff]  ;;  %v524_v27 = vsel %vm522_vm2, %v462_v26, 0  ;;  %v607_v56 = vunpack.c.l.b16 %v462_v26 }
  0x15   : > { %533 = vmatpush.bf16.msra.mxu1 %v524_v27  ;;  %v574_v59 = vld [vmem:[#allocation2 + $0x8] sm:$0xff]  ;;  %456 = vst.msk [vmem:[#allocation4] sm:$0xff] %vm455_vm3, %v1202_v16 }
  0x16   : > { %640 = vrot.lane.b32.xlu2 %v549_v14, %s1201_s17  ;;  %v608_v58 = vpack.c.b16 %v607_v56, %v607_v56  ;;  %v664_v3 = vld [vmem:[#allocation2 + $0x10] sm:$0xff] }
  0x17   : > { %v1340_v63 = vld [vmem:[#allocation2 + $0x18] sm:$0xff] }
  0x1a   : > { %1102 = vmatmul.msk.bf16.vlgmr.msra.gmra.mxu0 %vm465_vm0, %v458_v4 }
  0x1e   : > { %638 = vrot.lane.b32.xlu2 %v544_v18, %s1201_s17 }
  0x26   : > { %725 = vrot.lane.b32.xlu2 %v544_v18, %s1203_s18 }
  0x70   : > { %v641_v28 = vpop.permute.xlu2 %640 }
  0x71   : > { %v646_v29 = vsel %vm465_vm0, %v641_v28, 0 }
  0x72   : > { %655 = vmatpush.bf16.xpose.msrb.mxu1 %v646_v29 }
  0x78   : > { %v639_v36 = vpop.permute.xlu2 %638 }
  0x80   : > { %v726_v39 = vpop.permute.xlu2 %725 }
  0x97   : > { %v481_v8 = vpop.f32.mrf.mxu0 }
  0x98   : > { %v485_v9 = vmul.f32 0.35355338, %v481_v8 }
  0x9a   : > { %v486_v10 = vadd.f32 %v485_v9, %v1284_v7 }
  0x9c   : > { %v488_v11 = vsel %vm465_vm0, %v486_v10, -inf }
  0x9d   : > { %489 = vmax.xlane.f32.xlu0 %v488_v11 }
  0x9f   : > { %v483_v12 = vpop.f32.mrf.mxu0 }
  0xb1   : > { %550 = vrot.lane.b32.xlu0 %v549_v14, %s1200_s16 }
 0x110   : > { %v490_v20 = vpop.xlane.xlu0 %489 }
 0x111   : > { %v1303_v21 = vmax.f32 %v1300_v19, %v490_v20 }
 0x113   : > { %v492_v22 = vsub.f32 %v1300_v19, %v1303_v21  ;;  %541 = vst.msk [vmem:[#allocation2] sm:$0xff] %vm446_vm1, %v1303_v21  ;;  %497 = vperm.xlu1 %1146, %v1303_v21  }
 0x115   : > { %v493_v4 = vmul.f32 1.442695, %v492_v22 }
 0x11b   : > { %545 = vrot.lane.b32.xlu1 %v544_v18, %s1200_s16 }
 0x123   : > { %727 = vrot.lane.b32.xlu1 %v549_v14, %s1203_s18  ;;  %v551_v23 = vpop.permute.xlu0 %550 }
 0x124   : > { %v556_v24 = vsel %vm465_vm0, %v551_v23, 0 }
 0x125   : > { %565 = vmatpush.bf16.xpose.msra.mxu2 %v556_v24 }
 0x185   : > { %v498_v30 = vpop.permute.xlu1 %497 }
 0x186   : > { %v500_v31 = vsub.f32 %v486_v10, %v498_v30 }
 0x188   : > { %v501_v32 = vmul.f32 1.442695, %v500_v31  ;;  %v511_v31 = vld [vmem:[#allocation4] sm:$0xff] }
 0x18a   : > { %1150 = vpow2.f32 %v501_v32 }
 0x18b   : > { %1152 = vpow2.f32 %v493_v4 }
 0x18d   : > { %v546_v33 = vpop.permute.xlu1 %545 }
 0x18e   : > { %1104 = vmatmul.msk.bf16.vlgmr.msra.gmra.mxu2 %vm465_vm0, %v546_v33 }
 0x190   : > { %v1151_v34 = vpop.eup %1150 }
 0x191   : > { %v518_v35 = vpack.c.bf16 %v1151_v34, %v1151_v34  ;;  %v1153_v8 = vpop.eup %1152  ;;  %v505_v9 = vsel %vm465_vm0, %v1151_v34, 0.0 }
 0x193   : > { %1103 = vmatmul.msk.bf16.vlgmr.msra.gmra.mxu1 %vm465_vm0, %v518_v35 }
 0x195   : > { %v728_v37 = vpop.permute.xlu1 %727 }
 0x196   : > { %v733_v38 = vsel %vm465_vm0, %v728_v37, 0 }
 0x197   : > { %742 = vmatpush.bf16.xpose.msrb.mxu0 %v733_v38 }
 0x19e   : > { %1108 = vmatmul.msk.bf16.vlgmr.msrb.gmra.mxu0 %vm465_vm0, %v726_v39 }
 0x1a3   : > { %1106 = vmatmul.msk.bf16.vlgmr.msrb.gmra.mxu1 %vm465_vm0, %v639_v36 }
 0x210   : > { %v1324_v40 = vpop.f32.mrf.mxu1 }
 0x211   : > { %v567_v41 = vpop.f32.mrf.mxu2 }
 0x212   : > { %v571_v42 = vmul.f32 0.35355338, %v567_v41 }
 0x214   : > { %v572_v43 = vadd.f32 %v571_v42, %v1284_v7 }
 0x216   : > { %v575_v44 = vsel %vm465_vm0, %v572_v43, -inf }
 0x217   : > { %576 = vmax.xlane.f32.xlu1 %v575_v44 }
 0x218   : > { %v537_v45 = vpop.f32.mrf.mxu1 }
 0x219   : > { %v569_v46 = vpop.f32.mrf.mxu2 }
 0x21b   : > { %v744_v47 = vpop.f32.mrf.mxu0 }
 0x21c   : > { %v748_v48 = vmul.f32 0.35355338, %v744_v47 }
 0x21e   : > { %v1329_v49 = vadd.f32 %v748_v48, %v1284_v7 }
 0x220   : > { %v657_v50 = vpop.f32.mrf.mxu1  ;;  %v752_v51 = vsel %vm465_vm0, %v1329_v49, -inf }
 0x221   : > { %v661_v52 = vmul.f32 0.35355338, %v657_v50  ;;  %753 = vmax.xlane.f32.xlu0 %v752_v51 }
 0x223   : > { %v1334_v53 = vadd.f32 %v661_v52, %v1284_v7  ;;  %v746_v54 = vpop.f32.mrf.mxu0 }
 0x225   : > { %v665_v55 = vsel %vm465_vm0, %v1334_v53, -inf }
 0x226   : > { %666 = vmax.xlane.f32.xlu2 %v665_v55 }
 0x228   : > { %v659_v57 = vpop.f32.mrf.mxu1 }
 0x229   : > { %v591_v57 = vld [vmem:[#allocation3 + $0x8] sm:$0xff] }
 0x230   : > { %609 = vrot.lane.b32.xlu1 %v608_v58, %s1200_s16  ;;  %s433_s16 = scalar_lea.vmem %s1426_s6, %s1265_s28 }
 0x28a   : > { %v577_v60 = vpop.xlane.xlu1 %576 }
 0x28b   : > { %v578_v61 = vmax.f32 %v574_v59, %v577_v60 }
 0x28d   : > { %v579_v62 = vsub.f32 %v574_v59, %v578_v61  ;;  %637 = vst.msk [vmem:[#allocation2 + $0x8] sm:$0xff] %vm446_vm1, %v578_v61  ;;  %584 = vperm.xlu2 %1147, %v578_v61  }
 0x28f   : > { %v580_v23 = vmul.f32 1.442695, %v579_v62 }
 0x294   : > { %v754_v0 = vpop.xlane.xlu0 %753 }
 0x295   : > { %v1343_v1 = vmax.f32 %v1340_v63, %v754_v0  ;;  %696 = vrot.lane.b32.xlu2 %v608_v58, %s1201_s17 }
 0x297   : > { %v756_v2 = vsub.f32 %v1340_v63, %v1343_v1  ;;  %811 = vst.msk [vmem:[#allocation2 + $0x18] sm:$0xff] %vm446_vm1, %v1343_v1  ;;  %761 = vperm.xlu1 %1146, %v1343_v1  }
 0x299   : > { %v667_v5 = vpop.xlane.xlu2 %666  ;;  %v757_v62 = vmul.f32 1.442695, %v756_v2 }
 0x29a   : > { %v668_v6 = vmax.f32 %v664_v3, %v667_v5 }
 0x29c   : > { %v669_v7 = vsub.f32 %v664_v3, %v668_v6  ;;  %724 = vst.msk [vmem:[#allocation2 + $0x10] sm:$0xff] %vm446_vm1, %v668_v6  ;;  %674 = vperm.xlu0 %1148, %v668_v6  }
 0x29d   : > { %783 = vrot.lane.b32.xlu2 %v608_v58, %s1203_s18 }
 0x29e   : > { %v670_v41 = vmul.f32 1.442695, %v669_v7 }
 0x2a2   : > { %v610_v10 = vpop.permute.xlu1 %609 }
 0x2a3   : > { %v615_v11 = vsel %vm522_vm2, %v610_v10, 0 }
 0x2a4   : > { %514 = vperm.xlu0 %1148, %v1153_v8   ;;  %624 = vmatpush.bf16.msra.mxu3 %v615_v11 }
 0x2c1   : > { %506 = vadd.xlane.f32.xlu1 %v505_v9 }
 0x2e7   : > { %v585_v12 = vpop.permute.xlu2 %584 }
 0x2e8   : > { %v587_v13 = vsub.f32 %v572_v43, %v585_v12  ;;  %v503_v43 = vld [vmem:[#allocation3] sm:$0xff]  ;;  %v768_v12 = vld [vmem:[#allocation3 + $0x18] sm:$0xff] }
 0x2e9   : > { %v504_v44 = vmul.f32 %v1153_v8, %v503_v43 }
 0x2ea   : > { %v588_v14 = vmul.f32 1.442695, %v587_v13 }
 0x2ec   : > { %1154 = vpow2.f32 %v588_v14 }
 0x2ed   : > { %1156 = vpow2.f32 %v580_v23 }
 0x2ef   : > { %v697_v15 = vpop.permute.xlu2 %696 }
 0x2f0   : > { %v702_v17 = vsel %vm522_vm2, %v697_v15, 0 }
 0x2f1   : > { %711 = vmatpush.bf16.msrb.mxu3 %v702_v17  ;;  %v681_v17 = vld [vmem:[#allocation3 + $0x10] sm:$0xff] }
 0x2f2   : > { %v1155_v18 = vpop.eup %1154 }
 0x2f3   : > { %v593_v19 = vsel %vm465_vm0, %v1155_v18, 0.0  ;;  %v605_v20 = vpack.c.bf16 %v1155_v18, %v1155_v18  ;;  %v1157_v16 = vpop.eup %1156 }
 0x2f4   : > { %594 = vadd.xlane.f32.xlu2 %v593_v19  ;;  %v592_v58 = vmul.f32 %v1157_v16, %v591_v57 }
 0x2f5   : > { %1105 = vmatmul.msk.bf16.vlgmr.msra.gmra.mxu3 %vm465_vm0, %v605_v20 }
 0x2f7   : > { %v784_v21 = vpop.permute.xlu2 %783 }
 0x2f8   : > { %v789_v22 = vsel %vm522_vm2, %v784_v21, 0 }
 0x2f9   : > { %798 = vmatpush.bf16.msrb.mxu2 %v789_v22 }
 0x309   : > { %v762_v24 = vpop.permute.xlu1 %761 }
 0x30a   : > { %v764_v25 = vsub.f32 %v1329_v49, %v762_v24 }
 0x30c   : > { %v765_v26 = vmul.f32 1.442695, %v764_v25  ;;  %601 = vperm.xlu2 %1147, %v1157_v16  }
 0x30e   : > { %1158 = vpow2.f32 %v765_v26  ;;  %v675_v27 = vpop.permute.xlu0 %674 }
 0x30f   : > { %v677_v28 = vsub.f32 %v1334_v53, %v675_v27 }
 0x311   : > { %v678_v29 = vmul.f32 1.442695, %v677_v28 }
 0x313   : > { %1160 = vpow2.f32 %v678_v29 }
 0x314   : > { %v1159_v30 = vpop.eup %1158  ;;  %1162 = vpow2.f32 %v670_v41 }
 0x315   : > { %v770_v32 = vsel %vm465_vm0, %v1159_v30, 0.0  ;;  %v782_v33 = vpack.c.bf16 %v1159_v30, %v1159_v30 }
 0x316   : > { %771 = vadd.xlane.f32.xlu1 %v770_v32  ;;  %v515_v34 = vpop.permute.xlu0 %514 }
 0x317   : > { %v517_v35 = vmul.f32 %v515_v34, %v511_v31  ;;  %1109 = vmatmul.msk.bf16.vlgmr.msrb.gmra.mxu2 %vm465_vm0, %v782_v33 }
 0x319   : > { %v1161_v36 = vpop.eup %1160  ;;  %v539_v37 = vadd.f32 %v1324_v40, %v517_v35 }
 0x31a   : > { %v683_v38 = vsel %vm465_vm0, %v1161_v36, 0.0  ;;  %v695_v39 = vpack.c.bf16 %v1161_v36, %v1161_v36  ;;  %v1163_v42 = vpop.eup %1162 }
 0x31b   : > { %540 = vst.msk [vmem:[#allocation4] sm:$0xff] %vm465_vm0, %v539_v37  ;;  %684 = vadd.xlane.f32.xlu0 %v683_v38  ;;  %v682_v18 = vmul.f32 %v1163_v42, %v681_v17 }
 0x31c   : > { %1107 = vmatmul.msk.bf16.vlgmr.msrb.gmra.mxu3 %vm465_vm0, %v695_v39 }
 0x32f   : > { %691 = vperm.xlu0 %1148, %v1163_v42  }
 0x334   : > { %v507_v45 = vpop.xlane.xlu1 %506 }
 0x335   : > { %v508_v46 = vadd.f32 %v507_v45, %v504_v44 }
 0x337   : > { %510 = vst.msk [vmem:[#allocation3] sm:$0xff] %vm446_vm1, %v508_v46 }
 0x33e   : > { %v816_v47 = vld [vmem:[#allocation3] sm:$0xff] }
 0x33f   : > { %1164 = vrcp.f32 %v816_v47  ;;  %v828_v50 = vand.u32 2147483648, %v816_v47  ;;  %v826_v52 = vand.u32 2147483647, %v816_v47  ;;  %vm822_vm5 = vweird.f32 %v816_v47 }
 0x341   : > { %v829_v54 = vor.u32 1.1754944e-38, %v828_v50  ;;  %vm827_vm7 = vcmp.eq.f32.partialorder %v826_v52, 8.507059e+37 }
 0x345   : > { %v1165_v40 = vpop.eup %1164 }
 0x346   : > { %v818_v48 = vmul.f32 %v1165_v40, %v816_v47  ;;  %vm823_vm4 = vweird.f32 %v1165_v40 }
 0x347   : > { %vm824_vm6 = vmor %vm822_vm5, %vm823_vm4 }
 0x348   : > { %v819_v49 = vsub.f32 1.0, %v818_v48 }
 0x34a   : > { %v820_v51 = vmul.f32 %v1165_v40, %v819_v49 }
 0x34c   : > { %v821_v53 = vadd.f32 %v1165_v40, %v820_v51 }
 0x34e   : > { %v825_v55 = vsel %vm824_vm6, %v1165_v40, %v821_v53  ;;  %v598_v40 = vld [vmem:[#allocation4] sm:$0xff]  ;;  %vm635_vm6 = vcmask 130112  }
 0x34f   : > { %v830_v56 = vsel %vm827_vm7, %v829_v54, %v825_v55  ;;  %vm722_vm7 = vcmask 195712  }
 0x350   : > { %834 = vperm.xlu0 %1148, %v830_v56  }
 0x367   : > { %v595_v59 = vpop.xlane.xlu2 %594 }
 0x368   : > { %v596_v60 = vadd.f32 %v595_v59, %v592_v58 }
 0x36a   : > { %597 = vst.msk [vmem:[#allocation3 + $0x8] sm:$0xff] %vm446_vm1, %v596_v60 }
 0x36f   : > { %v602_v47 = vpop.permute.xlu2 %601 }
 0x370   : > { %v604_v48 = vmul.f32 %v602_v47, %v598_v40 }
 0x371   : > { %v840_v61 = vld [vmem:[#allocation3 + $0x8] sm:$0xff] }
 0x372   : > { %1166 = vrcp.f32 %v840_v61  ;;  %v852_v10 = vand.u32 2147483648, %v840_v61  ;;  %vm846_vm9 = vweird.f32 %v840_v61  ;;  %v850_v11 = vand.u32 2147483647, %v840_v61 }
 0x373   : > { %1168 = vpow2.f32 %v757_v62 }
 0x374   : > { %v853_v1 = vor.u32 1.1754944e-38, %v852_v10  ;;  %vm851_vm11 = vcmp.eq.f32.partialorder %v850_v11, 8.507059e+37 }
 0x378   : > { %v1167_v0 = vpop.eup %1166  ;;  %v626_v3 = vpop.f32.mrf.mxu3 }
 0x379   : > { %631 = vrot.lane.b32.xlu1 %v626_v3, %s1204_s22  ;;  %v842_v4 = vmul.f32 %v1167_v0, %v840_v61  ;;  %v1169_v7 = vpop.eup %1168  ;;  %vm847_vm8 = vweird.f32 %v1167_v0  ;;  %v915_v3 = vld [vmem:[%s1424_s4 + $0x10] sm:$0xff] }
 0x37a   : > { %vm848_vm10 = vmor %vm846_vm9, %vm847_vm8  ;;  %v769_v2 = vmul.f32 %v1169_v7, %v768_v12  ;;  %vm809_vm8 = vcmask 261312  }
 0x37b   : > { %v843_v5 = vsub.f32 1.0, %v842_v4  ;;  %v916_v4 = vld [vmem:[%s1424_s4 + $0x18] sm:$0xff] }
 0x37d   : > { %v844_v6 = vmul.f32 %v1167_v0, %v843_v5  ;;  %v913_v5 = vld [vmem:[%s1424_s4] sm:$0xff] }
 0x37f   : > { %v845_v9 = vadd.f32 %v1167_v0, %v844_v6  ;;  %v918_v6 = vpack.c.bf16 %v916_v4, %v915_v3 }
 0x380   : > { %v628_v8 = vpop.f32.mrf.mxu3 }
 0x381   : > { %778 = vperm.xlu1 %1146, %v1169_v7   ;;  %v849_v63 = vsel %vm848_vm10, %v1167_v0, %v845_v9  ;;  %v914_v7 = vld [vmem:[%s1424_s4 + $0x8] sm:$0xff]  ;;  %933 = vmatpush.bf16.msra.mxu1 %v918_v6 }
 0x382   : > { %v854_v13 = vsel %vm851_vm11, %v853_v1, %v849_v63  ;;  %v917_v8 = vpack.c.bf16 %v914_v7, %v913_v5 }
 0x385   : > { %934 = vmatpush.bf16.msra.mxu1 %v917_v8 }
 0x389   : > { %v772_v14 = vpop.xlane.xlu1 %771  ;;  %858 = vperm.xlu1 %1146, %v854_v13  }
 0x38a   : > { %v773_v15 = vadd.f32 %v772_v14, %v769_v2 }
 0x38c   : > { %774 = vst.msk [vmem:[#allocation3 + $0x18] sm:$0xff] %vm446_vm1, %v773_v15 }
 0x38e   : > { %v685_v19 = vpop.xlane.xlu0 %684 }
 0x38f   : > { %v686_v20 = vadd.f32 %v685_v19, %v682_v18  ;;  %v1149_v18 = vld [vmem:[%s1425_s5] ss:$0 sm:$0xff] }
 0x391   : > { %687 = vst.msk [vmem:[#allocation3 + $0x10] sm:$0xff] %vm446_vm1, %v686_v20  ;;  %v940_v20 = vld [vmem:[%s433_s16] sm:$0xff] }
 0x393   : > { %v888_v21 = vld [vmem:[#allocation3 + $0x18] sm:$0xff] }
 0x394   : > { %1170 = vrcp.f32 %v888_v21  ;;  %v900_v26 = vand.u32 2147483648, %v888_v21  ;;  %v898_v30 = vand.u32 2147483647, %v888_v21  ;;  %vm894_vm13 = vweird.f32 %v888_v21 }
 0x396   : > { %v901_v34 = vor.u32 1.1754944e-38, %v900_v26  ;;  %vm899_vm15 = vcmp.eq.f32.partialorder %v898_v30, 8.507059e+37 }
 0x398   : > { %v864_v22 = vld [vmem:[#allocation3 + $0x10] sm:$0xff] }
 0x399   : > { %1172 = vrcp.f32 %v864_v22  ;;  %v876_v42 = vand.u32 2147483648, %v864_v22  ;;  %vm870_vm2 = vweird.f32 %v864_v22  ;;  %v874_v43 = vand.u32 2147483647, %v864_v22 }
 0x39a   : > { %v1171_v23 = vpop.eup %1170  ;;  %v800_v24 = vpop.f32.mrf.mxu2 }
 0x39b   : > { %v890_v25 = vmul.f32 %v1171_v23, %v888_v21  ;;  %vm895_vm12 = vweird.f32 %v1171_v23  ;;  %v877_v45 = vor.u32 1.1754944e-38, %v876_v42  ;;  %vm875_vm5 = vcmp.eq.f32.partialorder %v874_v43, 8.507059e+37 }
 0x39c   : > { %vm896_vm14 = vmor %vm894_vm13, %vm895_vm12 }
 0x39d   : > { %v891_v16 = vsub.f32 1.0, %v890_v25 }
 0x39f   : > { %v1173_v27 = vpop.eup %1172  ;;  %v713_v28 = vpop.f32.mrf.mxu3  ;;  %v892_v29 = vmul.f32 %v1171_v23, %v891_v16 }
 0x3a0   : > { %718 = vrot.lane.b32.xlu2 %v713_v28, %s1205_s23  ;;  %v866_v31 = vmul.f32 %v1173_v27, %v864_v22  ;;  %vm871_vm1 = vweird.f32 %v1173_v27 }
 0x3a1   : > { %v893_v32 = vadd.f32 %v1171_v23, %v892_v29  ;;  %vm872_vm4 = vmor %vm870_vm2, %vm871_vm1  ;;  %v692_v52 = vpop.permute.xlu0 %691 }
 0x3a2   : > { %v802_v33 = vpop.f32.mrf.mxu2  ;;  %v867_v35 = vsub.f32 1.0, %v866_v31 }
 0x3a3   : > { %v897_v36 = vsel %vm896_vm14, %v1171_v23, %v893_v32 }
 0x3a4   : > { %v902_v37 = vsel %vm899_vm15, %v901_v34, %v897_v36  ;;  %v868_v38 = vmul.f32 %v1173_v27, %v867_v35 }
 0x3a5   : > { %906 = vperm.xlu0 %1148, %v902_v37  }
 0x3a6   : > { %v869_v41 = vadd.f32 %v1173_v27, %v868_v38 }
 0x3a7   : > { %v715_v39 = vpop.f32.mrf.mxu3 }
 0x3a8   : > { %805 = vrot.lane.b32.xlu2 %v800_v24, %s1206_s24  ;;  %v873_v44 = vsel %vm872_vm4, %v1173_v27, %v869_v41 }
 0x3a9   : > { %v878_v46 = vsel %vm875_vm5, %v877_v45, %v873_v44 }
 0x3b0   : > { %882 = vperm.xlu2 %1147, %v878_v46  }
 0x3c2   : > { %v835_v61 = vpop.permute.xlu0 %834 }
 0x3eb   : > { %v632_v49 = vpop.permute.xlu1 %631 }
 0x3ec   : > { %v634_v50 = vadd.f32 %v632_v49, %v604_v48 }
 0x3ee   : > { %636 = vst.msk [vmem:[#allocation4] sm:$0xff] %vm635_vm6, %v634_v50 }
 0x3f3   : > { %v779_v56 = vpop.permute.xlu1 %778 }
 0x3f5   : > { %v688_v51 = vld [vmem:[#allocation4] sm:$0xff] }
 0x3f6   : > { %v694_v53 = vmul.f32 %v692_v52, %v688_v51 }
 0x3fa   : > { %v719_v54 = vpop.permute.xlu2 %718 }
 0x3fb   : > { %v721_v55 = vadd.f32 %v719_v54, %v694_v53  ;;  %v859_v9 = vpop.permute.xlu1 %858 }
 0x3fd   : > { %723 = vst.msk [vmem:[#allocation4] sm:$0xff] %vm722_vm7, %v721_v55 }
 0x402   : > { %v806_v59 = vpop.permute.xlu2 %805 }
 0x404   : > { %v775_v57 = vld [vmem:[#allocation4] sm:$0xff] }
 0x405   : > { %v781_v58 = vmul.f32 %v779_v56, %v775_v57 }
 0x407   : > { %v808_v60 = vadd.f32 %v806_v59, %v781_v58 }
 0x409   : > { %810 = vst.msk [vmem:[#allocation4] sm:$0xff] %vm809_vm8, %v808_v60 }
 0x40a   : > { %v883_v12 = vpop.permute.xlu2 %882 }
 0x410   : > { %v815_v62 = vld [vmem:[#allocation4] sm:$0xff] }
 0x411   : > { %v837_v0 = vmul.f32 %v835_v61, %v815_v62 }
 0x413   : > { %838 = vst.msk [vmem:[#allocation4] sm:$0xff] %vm465_vm0, %v837_v0 }
 0x417   : > { %v907_v13 = vpop.permute.xlu0 %906 }
 0x41a   : > { %v839_v10 = vld [vmem:[#allocation4] sm:$0xff] }
 0x41b   : > { %v861_v11 = vmul.f32 %v859_v9, %v839_v10 }
 0x41d   : > { %862 = vst.msk [vmem:[#allocation4] sm:$0xff] %vm635_vm6, %v861_v11 }
 0x424   : > { %v863_v63 = vld [vmem:[#allocation4] sm:$0xff] }
 0x425   : > { %v885_v1 = vmul.f32 %v883_v12, %v863_v63 }
 0x427   : > { %886 = vst.msk [vmem:[#allocation4] sm:$0xff] %vm722_vm7, %v885_v1 }
 0x42e   : > { %v887_v2 = vld [vmem:[#allocation4] sm:$0xff] }
 0x42f   : > { %v909_v14 = vmul.f32 %v907_v13, %v887_v2 }
 0x431   : > { %910 = vst.msk [vmem:[#allocation4] sm:$0xff] %vm809_vm8, %v909_v14 }
 0x438   : > { %v911_v15 = vld [vmem:[#allocation4] sm:$0xff] }
 0x439   : > { %v912_v17 = vpack.c.bf16 %v911_v15, %v911_v15 }
 0x43b   : > { %1110 = vmatmul.msk.bf16.vlgmr.msra.gmra.mxu1 %vm455_vm3, %v912_v17 }
 0x4b8   : > { %v936_v19 = vpop.f32.mrf.mxu1 }
 0x4b9   : > { %v937_v21 = vadd.f32 %v1149_v18, %v936_v19 }
 0x4bb   : > { %v941_v22 = vadd.f32 %v940_v20, %v937_v21 }
 0x4bd   : > { %942 = vst.msk [vmem:[%s440_s21] sm:$0xff] %vm455_vm3, %v941_v22 }
 0x4c0   : > { %v938_v23 = vpop.f32.mrf.mxu1 }
 0x4c1 PF: > { %s17_s26 = sadd.s32 1, %s1196_s26   ;;  %s1428_s24 = smov %s1192_s25 }
 0x4c2   : > { %p14_p5 = scmp.ge.s32.totalorder %s17_s26, 4   ;;  %s1429_s25 = smov %s1431_s27 }
 0x4c4   :  { %16 = sbr.rel (!%p14_p5) target bundleno = 2 (0x2), region = 104 }

// kernel: attention_block.13
= control target key start
LH: loop header
LB: loop body
LE: loop exit
PB: predicated region body
PF: predicated region fallthrough
CT: control target
= control target key end

     0   :  { %vm19_vm0 = vcmask 261120   ;;  %s184_s0 = inlined_call_operand.vmem [shape: f32[16,32], index: 0, kind: input, shape index: {}]   ;;  %s185_s1 = inlined_call_operand.vmem [shape: f32[1,32], index: 1, kind: input, shape index: {}]   ;;  %s186_s2 = inlined_call_operand.vmem [shape: f32[1,32], index: 2, kind: input, shape index: {}]   ;;  %s187_s3 = inlined_call_operand.hbm [shape: f32[16,32], index: 3, kind: output, shape index: {}]  }
   0x1   :  { %v15_v0 = vld [vmem:[%s184_s0] sm:$0xff] }
   0x2   :  { %v20_v1 = vsel %vm19_vm0, %v15_v0, 0.0 }
   0x3   :  { %8 = vsyncpa [#allocation3], 0  ;;  %21 = vadd.xlane.f32.xlu0 %v20_v1  ;;  %v16_v2 = vld [vmem:[%s184_s0 + $0x8] sm:$0xff]  ;;  %v139_v4 = vmov 32.0   ;;  %v105_v35 = vld [vmem:[%s185_s1] ss:$0 sm:$0xff] }
   0x4   :  { %v23_v3 = vsel %vm19_vm0, %v16_v2, 0.0  ;;  %107 = vrcp.f32 %v139_v4  ;;  %v106_v39 = vld [vmem:[%s186_s2] ss:$0 sm:$0xff]  ;;  %s140_s1 = smov [#allocation2]   ;;  %s89_s22 = sshll.u32 %s187_s3, 4  ;;  %s90_s22 = int_to_ptr.hbm [resolvable:$true] %s89_s22 }
   0x5   :  { %s87_s19 = sshll.u32 %s140_s1, 4  ;;  %s141_s2 = smov 128   ;;  %s88_s19 = int_to_ptr.vmem [resolvable:$true] %s87_s19 }
   0x6   :  { %s142_s23 = smov 8  }
   0xa   :  { %v108_v5 = vpop.eup %107 }
   0xb   :  { %24 = vadd.xlane.f32.xlu0 %v23_v3  ;;  %v27_v6 = vmul.f32 32.0, %v108_v5  ;;  %vm31_vm1 = vweird.f32 %v108_v5 }
   0xd   :  { %v28_v7 = vsub.f32 1.0, %v27_v6 }
   0xf   :  { %v29_v8 = vmul.f32 %v108_v5, %v28_v7 }
  0x11   :  { %v30_v9 = vadd.f32 %v108_v5, %v29_v8 }
  0x13   :  { %v32_v10 = vsel %vm31_vm1, %v108_v5, %v30_v9 }
  0x76   :  { %v22_v11 = vpop.xlane.xlu0 %21 }
  0x77   :  { %v33_v12 = vmul.f32 %v32_v10, %v22_v11 }
  0x79   :  { %v35_v13 = vsub.f32 %v15_v0, %v33_v12 }
  0x7b   :  { %v37_v14 = vmul.f32 %v35_v13, %v35_v13 }
  0x7d   :  { %v39_v15 = vsel %vm19_vm0, %v37_v14, 0.0 }
  0x7e   :  { %40 = vadd.xlane.f32.xlu1 %v39_v15  ;;  %v25_v16 = vpop.xlane.xlu0 %24 }
  0x7f   :  { %v34_v17 = vmul.f32 %v32_v10, %v25_v16 }
  0x81   :  { %v36_v18 = vsub.f32 %v16_v2, %v34_v17 }
  0x83   :  { %v38_v19 = vmul.f32 %v36_v18, %v36_v18 }
  0x85   :  { %v42_v20 = vsel %vm19_vm0, %v38_v19, 0.0 }
  0x86   :  { %43 = vadd.xlane.f32.xlu1 %v42_v20 }
  0xf1   :  { %v41_v21 = vpop.xlane.xlu1 %40 }
  0xf2   :  { %v45_v22 = vmul.f32 %v41_v21, %v32_v10 }
  0xf4   :  { %v47_v23 = vadd.f32 1e-05, %v45_v22 }
  0xf6   :  { %109 = vrsqrt.f32 %v47_v23  ;;  %vm55_vm3 = vweird.f32 %v47_v23 }
  0xf9   :  { %v44_v24 = vpop.xlane.xlu1 %43 }
  0xfa   :  { %v46_v25 = vmul.f32 %v44_v24, %v32_v10 }
  0xfc   :  { %v110_v26 = vpop.eup %109  ;;  %v48_v27 = vadd.f32 1e-05, %v46_v25 }
  0xfd   :  { %v50_v28 = vmul.f32 %v110_v26, %v47_v23  ;;  %vm56_vm2 = vweird.f32 %v110_v26 }
  0xfe   :  { %111 = vrsqrt.f32 %v48_v27  ;;  %vm57_vm4 = vmor %vm55_vm3, %vm56_vm2  ;;  %vm65_vm6 = vweird.f32 %v48_v27 }
  0xff   :  { %v51_v29 = vmul.f32 %v110_v26, %v50_v28 }
 0x101   :  { %v52_v30 = vmul.f32 0.5, %v51_v29 }
 0x103   :  { %v53_v31 = vsub.f32 1.5, %v52_v30 }
 0x104   :  { %v112_v32 = vpop.eup %111 }
 0x105   :  { %v54_v33 = vmul.f32 %v110_v26, %v53_v31  ;;  %v60_v34 = vmul.f32 %v112_v32, %v48_v27  ;;  %vm66_vm5 = vweird.f32 %v112_v32 }
 0x106   :  { %vm67_vm7 = vmor %vm65_vm6, %vm66_vm5 }
 0x107   :  { %v58_v36 = vsel %vm57_vm4, %v110_v26, %v54_v33  ;;  %v61_v37 = vmul.f32 %v112_v32, %v60_v34 }
 0x108   :  { %v69_v38 = vmul.f32 %v58_v36, %v35_v13 }
 0x109   :  { %v62_v40 = vmul.f32 0.5, %v61_v37 }
 0x10a   :  { %v74_v41 = vmul.f32 %v105_v35, %v69_v38 }
 0x10b   :  { %v63_v42 = vsub.f32 1.5, %v62_v40 }
 0x10c   :  { %v79_v43 = vadd.f32 %v106_v39, %v74_v41 }
 0x10d   :  { %v64_v44 = vmul.f32 %v112_v32, %v63_v42 }
 0x10e   :  { %81 = vst.msk [vmem:[#allocation2] sm:$0xff] %vm19_vm0, %v79_v43 }
 0x10f   :  { %v68_v45 = vsel %vm67_vm7, %v112_v32, %v64_v44 }
 0x110   :  { %v70_v46 = vmul.f32 %v68_v45, %v36_v18 }
 0x112   :  { %v75_v47 = vmul.f32 %v105_v35, %v70_v46 }
 0x114   :  { %v80_v48 = vadd.f32 %v106_v39, %v75_v47 }
 0x116   :  { %82 = vst.msk [vmem:[#allocation2 + $0x8] sm:$0xff] %vm19_vm0, %v80_v48 }
 0x117   :  { %95 = dma.vmem_to_hbm [thread:$0]  %s88_s19, 256, %s90_s22, [#allocation3], %s141_s2, %s141_s2, %s142_s23  }
 0x118   :  { %137 = dma.done.wait [#allocation3], 256  }
 0x119   :  { %138 = vsyncadd [#allocation3], 4294967040 }
 0x11a   :  { %100 = vsyncpa [#allocation3], 1 }

</bundles_post_ra>
